<compile_context>
chip_gen: v5e
topology: v5e:2x2
jax: 0.10.0
libtpu: 0.0.40
codegen_flags: <defaults>
</compile_context>

<pallas_src>
import functools

import numpy as np
import jax
import jax.numpy as jnp
from jax.experimental import pallas as pl
from jax.experimental.pallas import tpu as pltpu

EPS = 1e-5
MAX_TM = 512
MAX_TK = 512
MAX_TN = 256
VMEM_LIMIT = 48 * 1024 * 1024      # safe on v7x (64 MiB physical), ample on v5e/v6e


def _round_up(x, m):
    return (x + m - 1) // m * m


def _pick_lane_tile(d, max_tile):
    """Tile + padded extent for a lane (last) dim: multiple of 128 (or full dim
    when d <= 128), minimal padding, tile as large as possible."""
    if d <= 128:
        return d, d
    dp = _round_up(d, 128)
    for t in (512, 384, 256, 128):
        if t <= max_tile and dp % t == 0:
            return t, dp
    return 128, dp


def _pick_tm(M, max_tile=MAX_TM):
    """Adaptive row tile: big tiles for big M, no 16x waste for tiny M."""
    if M < 128:
        tm = max(16, _round_up(M, 16))
        return tm, tm
    for t in (max_tile, 384, 256, 128):
        if M % t == 0:
            return t, M
    if M < max_tile:
        tm = _round_up(M, 16)
        return tm, tm
    return 128, _round_up(M, 128)


# ---------------------------------------------------------------------------
# Pallas kernels
# ---------------------------------------------------------------------------
def matmul_bn_kernel(x_ref, w_ref, scale_ref, bias_ref, *rest,
                     apply_relu, has_residual):
    """o = act((x @ w) * scale + bias [+ residual])   grid = (M/tm, N/tn, K/tk)."""
    if has_residual:
        res_ref, o_ref, acc_ref = rest
    else:
        o_ref, acc_ref = rest
        res_ref = None

    @pl.when(pl.program_id(2) == 0)
    def _():
        acc_ref[...] = jnp.zeros_like(acc_ref)

    acc_ref[...] += jnp.dot(x_ref[...], w_ref[...],
                            preferred_element_type=jnp.float32)

    @pl.when(pl.program_id(2) == pl.num_programs(2) - 1)
    def _():
        y = acc_ref[...] * scale_ref[...] + bias_ref[...]
        if has_residual:
            y = y + res_ref[...].astype(jnp.float32)
        if apply_relu:
            y = jnp.maximum(y, 0.0)
        o_ref[...] = y.astype(o_ref.dtype)


def maxpool9_kernel(x_ref, o_ref):
    # x_ref: (9, tr, 128) -- the 9 taps of a 3x3 window, lane-dense slab.
    out = x_ref[0]
    for i in range(1, 9):
        out = jnp.maximum(out, x_ref[i])
    o_ref[...] = out


def global_pool_bn_kernel(x_ref, m_ref, scale_ref, bias_ref, o_ref,
                          sum_ref, max_ref, *, inv_hw):
    # x: (N, thw, C), mask: (N, thw, mC) broadcast in-kernel, out: (N, C) f32.
    @pl.when(pl.program_id(0) == 0)
    def _():
        sum_ref[...] = jnp.zeros_like(sum_ref)
        max_ref[...] = jnp.full(max_ref.shape, -jnp.inf, max_ref.dtype)

    xm = x_ref[...].astype(jnp.float32) * m_ref[...].astype(jnp.float32)
    sum_ref[...] += jnp.sum(xm, axis=1)
    max_ref[...] = jnp.maximum(max_ref[...], jnp.max(xm, axis=1))

    @pl.when(pl.program_id(0) == pl.num_programs(0) - 1)
    def _():
        y = (sum_ref[...] * inv_hw + max_ref[...]) * scale_ref[...] + bias_ref[...]
        o_ref[...] = y.astype(o_ref.dtype)


# ---------------------------------------------------------------------------
# Cached pallas_call builders (compile once per distinct shape)
# ---------------------------------------------------------------------------
@functools.lru_cache(maxsize=None)
def _matmul_bn_call(Mp, Kp, Np, tm, tk, tn, relu, has_res, out_dtype):
    kern = functools.partial(matmul_bn_kernel, apply_relu=relu,
                             has_residual=has_res)
    in_specs = [
        pl.BlockSpec((tm, tk), lambda i, j, k: (i, k)),
        pl.BlockSpec((tk, tn), lambda i, j, k: (k, j)),
        pl.BlockSpec((1, tn), lambda i, j, k: (0, j)),
        pl.BlockSpec((1, tn), lambda i, j, k: (0, j)),
    ]
    if has_res:
        in_specs.append(pl.BlockSpec((tm, tn), lambda i, j, k: (i, j)))
    fn = pl.pallas_call(
        kern,
        out_shape=jax.ShapeDtypeStruct((Mp, Np), out_dtype),
        grid_spec=pltpu.PrefetchScalarGridSpec(
            num_scalar_prefetch=0,
            grid=(Mp // tm, Np // tn, Kp // tk),
            in_specs=in_specs,
            out_specs=pl.BlockSpec((tm, tn), lambda i, j, k: (i, j)),
            scratch_shapes=[pltpu.VMEM((tm, tn), jnp.float32)],
        ),
        compiler_params=pltpu.CompilerParams(
            dimension_semantics=("parallel", "parallel", "arbitrary"),
            vmem_limit_bytes=VMEM_LIMIT),
    )
    return jax.jit(fn)


@functools.lru_cache(maxsize=None)
def _maxpool9_call(Rp, tr, dtype):
    fn = pl.pallas_call(
        maxpool9_kernel,
        out_shape=jax.ShapeDtypeStruct((Rp, 128), dtype),
        grid_spec=pltpu.PrefetchScalarGridSpec(
            num_scalar_prefetch=0,
            grid=(Rp // tr,),
            in_specs=[pl.BlockSpec((9, tr, 128), lambda r: (0, r, 0))],
            out_specs=pl.BlockSpec((tr, 128), lambda r: (r, 0)),
        ),
        compiler_params=pltpu.CompilerParams(
            dimension_semantics=("parallel",),
            vmem_limit_bytes=VMEM_LIMIT),
    )
    return jax.jit(fn)


@functools.lru_cache(maxsize=None)
def _global_pool_bn_call(N, HWp, thw, C, mC, HW_true):
    kern = functools.partial(global_pool_bn_kernel, inv_hw=1.0 / float(HW_true))
    fn = pl.pallas_call(
        kern,
        out_shape=jax.ShapeDtypeStruct((N, C), jnp.float32),
        grid_spec=pltpu.PrefetchScalarGridSpec(
            num_scalar_prefetch=0,
            grid=(HWp // thw,),
            in_specs=[
                pl.BlockSpec((N, thw, C), lambda h: (0, h, 0)),
                pl.BlockSpec((N, thw, mC), lambda h: (0, h, 0)),
                pl.BlockSpec((1, C), lambda h: (0, 0)),
                pl.BlockSpec((1, C), lambda h: (0, 0)),
            ],
            out_specs=pl.BlockSpec((N, C), lambda h: (0, 0)),
            scratch_shapes=[pltpu.VMEM((N, C), jnp.float32),
                            pltpu.VMEM((N, C), jnp.float32)],
        ),
        compiler_params=pltpu.CompilerParams(
            dimension_semantics=("arbitrary",),
            vmem_limit_bytes=VMEM_LIMIT),
    )
    return jax.jit(fn)


# ---------------------------------------------------------------------------
# Thin wrappers (padding / im2col glue)
# ---------------------------------------------------------------------------
def matmul_bn(x, cw, *, relu, residual=None, out_dtype=jnp.bfloat16):
    M, K = x.shape
    Kp, Np = cw["w"].shape
    tk, tn = cw["tk"], cw["tn"]
    tm, Mp = _pick_tm(M)

    xb = x.astype(jnp.bfloat16)
    if (Mp, Kp) != (M, K):
        xb = jnp.pad(xb, ((0, Mp - M), (0, Kp - K)))

    args = [xb, cw["w"], cw["s"], cw["b"]]
    if residual is not None:
        r = residual.astype(jnp.bfloat16)
        if r.shape != (Mp, Np):
            r = jnp.pad(r, ((0, Mp - r.shape[0]), (0, Np - r.shape[1])))
        args.append(r)

    out = _matmul_bn_call(Mp, Kp, Np, tm, tk, tn, bool(relu),
                          residual is not None, out_dtype)(*args)
    if (Mp, Np) != (M, cw["cout"]):
        out = out[:M, :cw["cout"]]
    return out


def im2col(x, kh, kw, stride, pad):
    N, H, W, C = x.shape
    Ho = (H + 2 * pad - kh) // stride + 1
    Wo = (W + 2 * pad - kw) // stride + 1
    xp = jnp.pad(x, ((0, 0), (pad, pad), (pad, pad), (0, 0)))
    taps = [xp[:, dy:dy + stride * Ho:stride, dx:dx + stride * Wo:stride, :]
            for dy in range(kh) for dx in range(kw)]
    return jnp.concatenate(taps, axis=-1), Ho, Wo  # (N, Ho, Wo, kh*kw*C)


def conv_bn(x, cw, kh, kw, stride, pad, relu, residual=None):
    N = x.shape[0]
    if kh == 1 and kw == 1 and pad == 0:
        if stride != 1:
            x = x[:, ::stride, ::stride, :]
        Ho, Wo = x.shape[1], x.shape[2]
        patches = x
    else:
        patches, Ho, Wo = im2col(x, kh, kw, stride, pad)
    K = patches.shape[-1]
    res_flat = None if residual is None else residual.reshape(N * Ho * Wo, -1)
    y = matmul_bn(patches.reshape(N * Ho * Wo, K), cw,
                  relu=relu, residual=res_flat)
    return y.reshape(N, Ho, Wo, cw["cout"])


def maxpool_3x3_s2(x):
    N, H, W, C = x.shape
    k, s, p = 3, 2, 1
    Ho = (H + 2 * p - k) // s + 1
    Wo = (W + 2 * p - k) // s + 1
    xp = jnp.pad(x, ((0, 0), (p, p), (p, p), (0, 0)),
                 constant_values=-jnp.inf)
    taps = [xp[:, dy:dy + s * Ho:s, dx:dx + s * Wo:s, :]
            for dy in range(k) for dx in range(k)]
    stacked = jnp.stack(taps, axis=0).reshape(9, -1)   # (9, E)
    E = N * Ho * Wo * C
    rows = pl.cdiv(E, 128)
    tr = min(512, max(8, _round_up(rows, 8)))
    Rp = _round_up(rows, tr)
    Ep = Rp * 128
    if Ep != E:
        stacked = jnp.pad(stacked, ((0, 0), (0, Ep - E)))
    stacked = stacked.reshape(9, Rp, 128)              # lane-dense slab
    out = _maxpool9_call(Rp, tr, x.dtype)(stacked)
    return out.reshape(-1)[:E].reshape(N, Ho, Wo, C)


def global_pool_last_bn(x, mask, scale, bias):
    # x: (N, H, W, C) bf16, mask: (N, HW, mC) -- broadcast happens in-kernel.
    N, H, W, C = x.shape
    HW = H * W
    x3 = x.reshape(N, HW, C)
    mC = mask.shape[-1]
    if HW <= 128:
        thw, HWp = HW, HW
    else:
        thw = 128
        HWp = _round_up(HW, thw)
    if HWp != HW:
        x3 = jnp.pad(x3, ((0, 0), (0, HWp - HW), (0, 0)))
        mask = jnp.pad(mask, ((0, 0), (0, HWp - HW), (0, 0)))
    return _global_pool_bn_call(N, HWp, thw, C, mC, HW)(x3, mask, scale, bias)


# ---------------------------------------------------------------------------
# Deterministic parameter construction (shapes of torchvision resnet50)
# ---------------------------------------------------------------------------
def make_bn(key, c):
    k1, k2, k3, k4 = jax.random.split(key, 4)
    gamma = 1.0 + 0.1 * jax.random.normal(k1, (c,), jnp.float32)
    beta = 0.1 * jax.random.normal(k2, (c,), jnp.float32)
    rmean = 0.1 * jax.random.normal(k3, (c,), jnp.float32)
    rvar = 1.0 + 0.5 * jax.random.uniform(k4, (c,), jnp.float32)
    scale = gamma / jnp.sqrt(rvar + EPS)
    bias = beta - rmean * scale
    return scale.reshape(1, c), bias.reshape(1, c)


def make_conv_bn(key, kh, kw, cin, cout):
    k_w, k_bn = jax.random.split(key)
    std = 1.0 / np.sqrt(kh * kw * cin)
    w = jax.random.normal(k_w, (kh, kw, cin, cout), jnp.float32) * std
    w = w.reshape(kh * kw * cin, cout)                # im2col layout
    K, Ncol = w.shape
    tk, Kp = _pick_lane_tile(K, MAX_TK)
    tn, Np = _pick_lane_tile(Ncol, MAX_TN)
    scale, bias = make_bn(k_bn, cout)                 # fused eval-mode BN
    return {
        "w": jnp.pad(w, ((0, Kp - K), (0, Np - Ncol))).astype(jnp.bfloat16),
        "s": jnp.pad(scale, ((0, 0), (0, Np - Ncol))),
        "b": jnp.pad(bias, ((0, 0), (0, Np - Ncol))),
        "tk": tk, "tn": tn, "cout": cout,
    }


def make_bottleneck(key, inplanes, planes, stride, has_downsample):
    ks = jax.random.split(key, 4)
    p = {"stride": stride}
    p["c1"] = make_conv_bn(ks[0], 1, 1, inplanes, planes)
    p["c2"] = make_conv_bn(ks[1], 3, 3, planes, planes)
    p["c3"] = make_conv_bn(ks[2], 1, 1, planes, planes * 4)
    if has_downsample:
        p["down"] = make_conv_bn(ks[3], 1, 1, inplanes, planes * 4)
    return p


def make_params(key):
    keys = iter(jax.random.split(key, 64))
    params = {}
    params["stem"] = make_conv_bn(next(keys), 7, 7, 3, 64)
    # (planes, n_blocks, stride of first block); layer4 stride forced to 1,
    # matching `layer4[0].conv2.stride = (1,1)` and downsample stride (1,1).
    cfg = [(64, 3, 1), (128, 4, 2), (256, 6, 2), (512, 3, 1)]
    layers = []
    inplanes = 64
    for planes, nblocks, stride in cfg:
        blocks = []
        for b in range(nblocks):
            s = stride if b == 0 else 1
            blocks.append(make_bottleneck(next(keys), inplanes, planes, s,
                                          has_downsample=(b == 0)))
            inplanes = planes * 4
        layers.append(blocks)
    params["layers"] = layers
    params["lbn_s"], params["lbn_b"] = make_bn(next(keys), 2048)   # last_bn
    return params


# ---------------------------------------------------------------------------
# Forward pass (mirrors ResNet50SegReID.forward)
# ---------------------------------------------------------------------------
def bottleneck_forward(x, p):
    if "down" in p:
        identity = conv_bn(x, p["down"], 1, 1, p["stride"], 0, relu=False)
    else:
        identity = x
    out = conv_bn(x, p["c1"], 1, 1, 1, 0, relu=True)
    out = conv_bn(out, p["c2"], 3, 3, p["stride"], 1, relu=True)
    # residual add + ReLU fused into the conv3 GEMM epilogue
    out = conv_bn(out, p["c3"], 1, 1, 1, 0, relu=True, residual=identity)
    return out


def resnet50_seg_reid_forward(params, x_nchw, seg_mask=None):
    x = jnp.transpose(x_nchw, (0, 2, 3, 1)).astype(jnp.bfloat16)  # NCHW -> NHWC
    # stem: conv1 -> bn1 (NO relu in the reference forward) -> maxpool
    x = conv_bn(x, params["stem"], 7, 7, 2, 3, relu=False)
    x = maxpool_3x3_s2(x)
    for layer in params["layers"]:
        for blk in layer:
            x = bottleneck_forward(x, blk)
    N, H, W, C = x.shape
    if seg_mask is None:
        mask = jnp.ones((N, H * W, 1), jnp.float32)
    else:
        mask = jnp.transpose(seg_mask, (0, 2, 3, 1)).reshape(
            N, H * W, -1).astype(jnp.float32)
    # (x * seg_mask) -> global_avgpool + global_maxpool -> flatten -> last_bn
    return global_pool_last_bn(x, mask, params["lbn_s"], params["lbn_b"])


if __name__ == "__main__":
    key = jax.random.PRNGKey(0)
    pkey, xkey = jax.random.split(key)
    params = make_params(pkey)
    x = jax.random.normal(xkey, (2, 3, 32, 32), jnp.float32)   # PyTorch NCHW input
    out = resnet50_seg_reid_forward(params, x, seg_mask=None)
    out = jax.block_until_ready(out)
    assert out.shape == (2, 2048), out.shape
    assert bool(jnp.all(jnp.isfinite(out)))
    print("KERNEL_OK")
</pallas_src>

<mosaic_0001>
module attributes {stable_mosaic.version = 11 : i64} {
  func.func @matmul_bn_kernel(%arg0: i32, %arg1: i32, %arg2: i32, %arg3: memref<512x256xbf16, #tpu.memory_space<vmem>>, %arg4: memref<256x64xbf16, #tpu.memory_space<vmem>>, %arg5: memref<1x64xf32, #tpu.memory_space<vmem>>, %arg6: memref<1x64xf32, #tpu.memory_space<vmem>>, %arg7: memref<512x64xbf16, #tpu.memory_space<vmem>>, %arg8: memref<512x64xf32, #tpu.memory_space<vmem>>) attributes {dimension_semantics = [#tpu.dimension_semantics<parallel>, #tpu.dimension_semantics<parallel>, #tpu.dimension_semantics<arbitrary>], iteration_bounds = array<i64: 1, 1, 1>, scalar_prefetch = 0 : i64, scratch_operands = 1 : i64, tpu.core_type = #tpu.core_type<tc>, window_params = [{transform_indices = @transform_0, window_bounds = array<i64: 512, 256>}, {transform_indices = @transform_1, window_bounds = array<i64: 256, 64>}, {transform_indices = @transform_2, window_bounds = array<i64: 1, 64>}, {transform_indices = @transform_3, window_bounds = array<i64: 1, 64>}, {transform_indices = @transform_4, window_bounds = array<i64: 512, 64>}]} {
    %c0_i32 = arith.constant 0 : i32
    %0 = arith.cmpi eq, %arg2, %c0_i32 : i32
    %1 = arith.extui %0 : i1 to i32
    %c0_i32_0 = arith.constant 0 : i32
    %2 = arith.cmpi ne, %1, %c0_i32_0 : i32
    scf.if %2 {
      %cst_10 = arith.constant 0.000000e+00 : f32
      %12 = vector.broadcast %cst_10 : f32 to vector<512x64xf32>
      %c0_11 = arith.constant 0 : index
      %c0_12 = arith.constant 0 : index
      %13 = vector.load %arg8[%c0_11, %c0_12] : memref<512x64xf32, #tpu.memory_space<vmem>>, vector<512x64xf32>
      tpu.vector_store %arg8[%c0_11, %c0_12], %12 {strides = array<i32>} : memref<512x64xf32, #tpu.memory_space<vmem>>, vector<512x64xf32>,
    } else {
    }
    %c0 = arith.constant 0 : index
    %c0_1 = arith.constant 0 : index
    %3 = vector.load %arg8[%c0, %c0_1] : memref<512x64xf32, #tpu.memory_space<vmem>>, vector<512x64xf32>
    %c0_2 = arith.constant 0 : index
    %c0_3 = arith.constant 0 : index
    %4 = vector.load %arg3[%c0_2, %c0_3] : memref<512x256xbf16, #tpu.memory_space<vmem>>, vector<512x256xbf16>
    %c0_4 = arith.constant 0 : index
    %c0_5 = arith.constant 0 : index
    %5 = vector.load %arg4[%c0_4, %c0_5] : memref<256x64xbf16, #tpu.memory_space<vmem>>, vector<256x64xbf16>
    %cst = arith.constant dense<0.000000e+00> : vector<512x64xf32>
    %6 = tpu.matmul %4, %5, %cst {dimension_numbers = #tpu.dot_dimension_numbers<[1], [0], [0], [1], [0, 0, 1, 1], [], []>} : vector<512x256xbf16>, vector<256x64xbf16>, vector<512x64xf32> -> vector<512x64xf32>
    %7 = arith.addf %3, %6 : vector<512x64xf32>
    %c0_6 = arith.constant 0 : index
    %c0_7 = arith.constant 0 : index
    %8 = vector.load %arg8[%c0_6, %c0_7] : memref<512x64xf32, #tpu.memory_space<vmem>>, vector<512x64xf32>
    tpu.vector_store %arg8[%c0_6, %c0_7], %7 {strides = array<i32>} : memref<512x64xf32, #tpu.memory_space<vmem>>, vector<512x64xf32>,
    %c0_i32_8 = arith.constant 0 : i32
    %9 = arith.cmpi eq, %arg2, %c0_i32_8 : i32
    %10 = arith.extui %9 : i1 to i32
    %c0_i32_9 = arith.constant 0 : i32
    %11 = arith.cmpi ne, %10, %c0_i32_9 : i32
    scf.if %11 {
      %c0_10 = arith.constant 0 : index
      %c0_11 = arith.constant 0 : index
      %12 = vector.load %arg8[%c0_10, %c0_11] : memref<512x64xf32, #tpu.memory_space<vmem>>, vector<512x64xf32>
      %c0_12 = arith.constant 0 : index
      %c0_13 = arith.constant 0 : index
      %13 = vector.load %arg5[%c0_12, %c0_13] : memref<1x64xf32, #tpu.memory_space<vmem>>, vector<1x64xf32>
      %14 = vector.broadcast %13 : vector<1x64xf32> to vector<512x64xf32>
      %15 = arith.mulf %12, %14 : vector<512x64xf32>
      %c0_14 = arith.constant 0 : index
      %c0_15 = arith.constant 0 : index
      %16 = vector.load %arg6[%c0_14, %c0_15] : memref<1x64xf32, #tpu.memory_space<vmem>>, vector<1x64xf32>
      %17 = vector.broadcast %16 : vector<1x64xf32> to vector<512x64xf32>
      %18 = arith.addf %15, %17 : vector<512x64xf32>
      %19 = arith.truncf %18 : vector<512x64xf32> to vector<512x64xbf16>
      %c0_16 = arith.constant 0 : index
      %c0_17 = arith.constant 0 : index
      %20 = vector.load %arg7[%c0_16, %c0_17] : memref<512x64xbf16, #tpu.memory_space<vmem>>, vector<512x64xbf16>
      tpu.vector_store %arg7[%c0_16, %c0_17], %19 {strides = array<i32>} : memref<512x64xbf16, #tpu.memory_space<vmem>>, vector<512x64xbf16>,
    } else {
    }
    return
  }
  func.func @transform_0(%arg0: i32, %arg1: i32, %arg2: i32) -> (i32, i32) {
    %c0_i32 = arith.constant 0 : i32
    return %arg0, %arg2 : i32, i32
  }
  func.func @transform_1(%arg0: i32, %arg1: i32, %arg2: i32) -> (i32, i32) {
    %c0_i32 = arith.constant 0 : i32
    return %arg2, %arg1 : i32, i32
  }
  func.func @transform_2(%arg0: i32, %arg1: i32, %arg2: i32) -> (i32, i32) {
    %c0_i32 = arith.constant 0 : i32
    %c0_i32_0 = arith.constant 0 : i32
    return %c0_i32, %arg1 : i32, i32
  }
  func.func @transform_3(%arg0: i32, %arg1: i32, %arg2: i32) -> (i32, i32) {
    %c0_i32 = arith.constant 0 : i32
    %c0_i32_0 = arith.constant 0 : i32
    return %c0_i32, %arg1 : i32, i32
  }
  func.func @transform_4(%arg0: i32, %arg1: i32, %arg2: i32) -> (i32, i32) {
    %c0_i32 = arith.constant 0 : i32
    return %arg0, %arg1 : i32, i32
  }
}

</mosaic_0001>

<bundles_post_ra>
// kernel: tpu_custom_call.1
= control target key start
LH: loop header
LB: loop body
LE: loop exit
PB: predicated region body
PF: predicated region fallthrough
CT: control target
= control target key end

     0   :  { %9 = vsyncpa [#allocation4], 0  ;;  %s1932_s18 = smov [#allocation3]   ;;  %s1933_s20 = smov 128   ;;  %s2608_s0 = inlined_call_operand.hbm [shape: bf16[512,256], index: 0, kind: input, shape index: {}]   ;;  %s2609_s1 = inlined_call_operand.vmem [shape: bf16[256,64], index: 1, kind: input, shape index: {}]   ;;  %s2610_s2 = inlined_call_operand.vmem [shape: f32[1,64], index: 2, kind: input, shape index: {}]   ;;  %s2611_s3 = inlined_call_operand.vmem [shape: f32[1,64], index: 3, kind: input, shape index: {}]   ;;  %s2612_s4 = inlined_call_operand.vmem [shape: bf16[512,64], index: 4, kind: output, shape index: {}]  }
   0x1   :  { %s14_s17 = sshll.u32 %s2608_s0, 4  ;;  %s16_s19 = sshll.u32 %s1932_s18, 4  ;;  %s15_s17 = int_to_ptr.hbm [resolvable:$true] %s14_s17  ;;  %s17_s19 = int_to_ptr.vmem [resolvable:$true] %s16_s19 }
   0x2   :  { %s1934_s21 = smov 8  }
   0x3   :  { %22 = dma.hbm_to_vmem [thread:$0]  %s15_s17, 8192, %s17_s19, [#allocation4], %s1933_s20, %s1933_s20, %s1934_s21  }
   0x4   :  { %1930 = dma.done.wait [#allocation4], 8192  }
   0x5   :  { %1931 = vsyncadd [#allocation4], 4294959104  ;;  %v1873_v0 = vld [vmem:[%s2609_s1 + $0x38] sm:$0xff]  ;;  %v1872_v2 = vld [vmem:[%s2609_s1 + $0x30] sm:$0xff]  ;;  %vm37_vm0 = vcmask 523264   ;;  %vm1412_vm1 = vcmask 519168  }
   0x6   :  { %v1881_v1 = vld [vmem:[%s2609_s1 + $0x78] sm:$0xff]  ;;  %678 = vmatpush.bf16.msra.mxu0 %v1873_v0  ;;  %1882 = vmatpush.bf16.msra.mxu2 %v1873_v0  ;;  %v1880_v3 = vld [vmem:[%s2609_s1 + $0x70] sm:$0xff]  ;;  %v1871_v4 = vld [vmem:[%s2609_s1 + $0x28] sm:$0xff] }
   0x7   :  { %847 = vmatpush.bf16.msra.mxu1 %v1881_v1  ;;  %1890 = vmatpush.bf16.msra.mxu3 %v1881_v1  ;;  %v1879_v5 = vld [vmem:[%s2609_s1 + $0x68] sm:$0xff]  ;;  %v1870_v6 = vld [vmem:[%s2609_s1 + $0x20] sm:$0xff]  ;;  %v1869_v8 = vld [vmem:[%s2609_s1 + $0x18] sm:$0xff] }
   0x8   :  { %v1878_v7 = vld [vmem:[%s2609_s1 + $0x60] sm:$0xff]  ;;  %v1877_v9 = vld [vmem:[%s2609_s1 + $0x58] sm:$0xff]  ;;  %v1868_v10 = vld [vmem:[%s2609_s1 + $0x10] sm:$0xff] }
   0x9   :  { %v1876_v11 = vld [vmem:[%s2609_s1 + $0x50] sm:$0xff]  ;;  %v1867_v12 = vld [vmem:[%s2609_s1 + $0x8] sm:$0xff]  ;;  %v1866_v14 = vld [vmem:[%s2609_s1] sm:$0xff] }
   0xa   :  { %679 = vmatpush.bf16.msra.mxu0 %v1872_v2  ;;  %1883 = vmatpush.bf16.msra.mxu2 %v1872_v2  ;;  %v1875_v13 = vld [vmem:[%s2609_s1 + $0x48] sm:$0xff]  ;;  %v1874_v15 = vld [vmem:[%s2609_s1 + $0x40] sm:$0xff]  ;;  %v1492_v28 = vld [vmem:[#allocation3 + $0x10] sm:$0xf] }
   0xb   :  { %848 = vmatpush.bf16.msra.mxu1 %v1880_v3  ;;  %1891 = vmatpush.bf16.msra.mxu3 %v1880_v3  ;;  %v1484_v16 = vld [vmem:[#allocation3] sm:$0xf]  ;;  %v1803_v17 = vld [vmem:[#allocation3 + $0x4] sm:$0xf0]  ;;  %v1802_v20 = vld [vmem:[#allocation3 + $0x4] sm:$0xf] }
   0xc   :  { %v1612_v18 = vld [vmem:[#allocation3 + $0x100] sm:$0xf]  ;;  %v1835_v19 = vld [vmem:[#allocation3 + $0x104] sm:$0xf0]  ;;  %v1486_v21 = vld [vmem:[#allocation3 + $0x8] sm:$0xf0]  ;;  %v1485_v24 = vor.u32 %v1803_v17, %v1484_v16 }
   0xd   :  { %v1834_v22 = vld [vmem:[#allocation3 + $0x104] sm:$0xf]  ;;  %v1614_v23 = vld [vmem:[#allocation3 + $0x108] sm:$0xf0]  ;;  %v1613_v25 = vor.u32 %v1835_v19, %v1612_v18  ;;  %v1489_v26 = vor.u32 %v1802_v20, %v1486_v21  ;;  %v1805_v29 = vld [vmem:[#allocation3 + $0x14] sm:$0xf0] }
   0xe   :  { %680 = vmatpush.bf16.msra.mxu0 %v1871_v4  ;;  %1884 = vmatpush.bf16.msra.mxu2 %v1871_v4  ;;  %v1617_v27 = vor.u32 %v1834_v22, %v1614_v23  ;;  %v1620_v30 = vld [vmem:[#allocation3 + $0x110] sm:$0xf]  ;;  %v1837_v31 = vld [vmem:[#allocation3 + $0x114] sm:$0xf0]  ;;  %v1804_v32 = vld [vmem:[#allocation3 + $0x14] sm:$0xf]  ;;  %v1493_v36 = vor.u32 %v1805_v29, %v1492_v28 }
   0xf   :  { %849 = vmatpush.bf16.msra.mxu1 %v1879_v5  ;;  %1892 = vmatpush.bf16.msra.mxu3 %v1879_v5  ;;  %v1494_v33 = vld [vmem:[#allocation3 + $0x18] sm:$0xf0]  ;;  %v1836_v34 = vld [vmem:[#allocation3 + $0x114] sm:$0xf]  ;;  %v1621_v37 = vor.u32 %v1837_v31, %v1620_v30  ;;  %v1500_v40 = vld [vmem:[#allocation3 + $0x20] sm:$0xf] }
  0x10   :  { %v1622_v35 = vld [vmem:[#allocation3 + $0x118] sm:$0xf0]  ;;  %v1497_v38 = vor.u32 %v1804_v32, %v1494_v33  ;;  %v1807_v41 = vld [vmem:[#allocation3 + $0x24] sm:$0xf0]  ;;  %v1628_v42 = vld [vmem:[#allocation3 + $0x120] sm:$0xf] }
  0x11   :  { %v1625_v39 = vor.u32 %v1836_v34, %v1622_v35  ;;  %v1839_v43 = vld [vmem:[#allocation3 + $0x124] sm:$0xf0]  ;;  %v1806_v44 = vld [vmem:[#allocation3 + $0x24] sm:$0xf]  ;;  %v1502_v45 = vld [vmem:[#allocation3 + $0x28] sm:$0xf0]  ;;  %v1501_v48 = vor.u32 %v1807_v41, %v1500_v40 }
  0x12   :  { %681 = vmatpush.bf16.msra.mxu0 %v1870_v6  ;;  %1885 = vmatpush.bf16.msra.mxu2 %v1870_v6  ;;  %v1838_v46 = vld [vmem:[#allocation3 + $0x124] sm:$0xf]  ;;  %v1630_v47 = vld [vmem:[#allocation3 + $0x128] sm:$0xf0]  ;;  %v1629_v49 = vor.u32 %v1839_v43, %v1628_v42  ;;  %v1505_v50 = vor.u32 %v1806_v44, %v1502_v45  ;;  %v1508_v52 = vld [vmem:[#allocation3 + $0x30] sm:$0xf] }
  0x13   :  { %850 = vmatpush.bf16.msra.mxu1 %v1878_v7  ;;  %1893 = vmatpush.bf16.msra.mxu3 %v1878_v7  ;;  %v1633_v51 = vor.u32 %v1838_v46, %v1630_v47  ;;  %v1809_v53 = vld [vmem:[#allocation3 + $0x34] sm:$0xf0]  ;;  %v1636_v54 = vld [vmem:[#allocation3 + $0x130] sm:$0xf]  ;;  %v1808_v56 = vld [vmem:[#allocation3 + $0x34] sm:$0xf] }
  0x14   :  { %v1841_v55 = vld [vmem:[#allocation3 + $0x134] sm:$0xf0]  ;;  %v1510_v57 = vld [vmem:[#allocation3 + $0x38] sm:$0xf0]  ;;  %v1840_v58 = vld [vmem:[#allocation3 + $0x134] sm:$0xf]  ;;  %v1509_v60 = vor.u32 %v1809_v53, %v1508_v52 }
  0x15   :  { %v1638_v59 = vld [vmem:[#allocation3 + $0x138] sm:$0xf0]  ;;  %v1637_v61 = vor.u32 %v1841_v55, %v1636_v54  ;;  %v1513_v62 = vor.u32 %v1808_v56, %v1510_v57  ;;  %v1516_v0 = vld [vmem:[#allocation3 + $0x40] sm:$0xf]  ;;  %v1811_v1 = vld [vmem:[#allocation3 + $0x44] sm:$0xf0] }
  0x16   :  { %682 = vmatpush.bf16.msra.mxu0 %v1869_v8  ;;  %1886 = vmatpush.bf16.msra.mxu2 %v1869_v8  ;;  %v1641_v63 = vor.u32 %v1840_v58, %v1638_v59  ;;  %v1644_v2 = vld [vmem:[#allocation3 + $0x140] sm:$0xf]  ;;  %v1843_v3 = vld [vmem:[#allocation3 + $0x144] sm:$0xf0]  ;;  %v1810_v4 = vld [vmem:[#allocation3 + $0x44] sm:$0xf]  ;;  %v1517_v8 = vor.u32 %v1811_v1, %v1516_v0 }
  0x17   :  { %851 = vmatpush.bf16.msra.mxu1 %v1877_v9  ;;  %1894 = vmatpush.bf16.msra.mxu3 %v1877_v9  ;;  %v1518_v5 = vld [vmem:[#allocation3 + $0x48] sm:$0xf0]  ;;  %v1842_v6 = vld [vmem:[#allocation3 + $0x144] sm:$0xf]  ;;  %v1645_v9 = vor.u32 %v1843_v3, %v1644_v2  ;;  %v1812_v16 = vld [vmem:[#allocation3 + $0x54] sm:$0xf] }
  0x18   :  { %v1646_v7 = vld [vmem:[#allocation3 + $0x148] sm:$0xf0]  ;;  %v1526_v17 = vld [vmem:[#allocation3 + $0x58] sm:$0xf0]  ;;  %v1844_v18 = vld [vmem:[#allocation3 + $0x154] sm:$0xf] }
  0x19   :  { %v1654_v19 = vld [vmem:[#allocation3 + $0x158] sm:$0xf0]  ;;  %v1529_v22 = vor.u32 %v1812_v16, %v1526_v17  ;;  %v1814_v28 = vld [vmem:[#allocation3 + $0x64] sm:$0xf]  ;;  %v1534_v29 = vld [vmem:[#allocation3 + $0x68] sm:$0xf0] }
  0x1a   :  { %683 = vmatpush.bf16.msra.mxu0 %v1868_v10  ;;  %1887 = vmatpush.bf16.msra.mxu2 %v1868_v10  ;;  %v1521_v10 = vor.u32 %v1810_v4, %v1518_v5  ;;  %v1657_v23 = vor.u32 %v1844_v18, %v1654_v19  ;;  %v1846_v30 = vld [vmem:[#allocation3 + $0x164] sm:$0xf]  ;;  %v1662_v31 = vld [vmem:[#allocation3 + $0x168] sm:$0xf0]  ;;  %v1537_v34 = vor.u32 %v1814_v28, %v1534_v29  ;;  %v1849_v40 = vld [vmem:[#allocation3 + $0x174] sm:$0xf0] }
  0x1b   :  { %852 = vmatpush.bf16.msra.mxu1 %v1876_v11  ;;  %1895 = vmatpush.bf16.msra.mxu3 %v1876_v11  ;;  %v1649_v11 = vor.u32 %v1842_v6, %v1646_v7  ;;  %v1665_v35 = vor.u32 %v1846_v30, %v1662_v31  ;;  %v1816_v41 = vld [vmem:[#allocation3 + $0x74] sm:$0xf]  ;;  %v1542_v42 = vld [vmem:[#allocation3 + $0x78] sm:$0xf0]  ;;  %v1851_v52 = vld [vmem:[#allocation3 + $0x184] sm:$0xf0] }
  0x1c   :  { %v1848_v43 = vld [vmem:[#allocation3 + $0x174] sm:$0xf]  ;;  %v1670_v44 = vld [vmem:[#allocation3 + $0x178] sm:$0xf0]  ;;  %v1545_v47 = vor.u32 %v1816_v41, %v1542_v42  ;;  %v1818_v53 = vld [vmem:[#allocation3 + $0x84] sm:$0xf] }
  0x1d   :  { %v1550_v54 = vld [vmem:[#allocation3 + $0x88] sm:$0xf0]  ;;  %v1850_v55 = vld [vmem:[#allocation3 + $0x184] sm:$0xf]  ;;  %v2094_v5 = vld [vmem:[%s2610_s2] ss:$0 sm:$0xff] }
  0x1e   :  { %684 = vmatpush.bf16.msra.mxu0 %v1867_v12  ;;  %1888 = vmatpush.bf16.msra.mxu2 %v1867_v12  ;;  %v1524_v12 = vld [vmem:[#allocation3 + $0x50] sm:$0xf]  ;;  %v1678_v56 = vld [vmem:[#allocation3 + $0x188] sm:$0xf0]  ;;  %v2101_v7 = vld [vmem:[%s2611_s3] ss:$0 sm:$0xff] }
  0x1f   :  { %853 = vmatpush.bf16.msra.mxu1 %v1875_v13  ;;  %1896 = vmatpush.bf16.msra.mxu3 %v1875_v13  ;;  %v1813_v13 = vld [vmem:[#allocation3 + $0x54] sm:$0xf0]  ;;  %v1686_v16 = vld [vmem:[#allocation3 + $0x198] sm:$0xf0]  ;;  %v1566_v41 = vld [vmem:[#allocation3 + $0xa8] sm:$0xf0] }
  0x20   :  { %v1525_v20 = vor.u32 %v1813_v13, %v1524_v12  ;;  %v1820_v12 = vld [vmem:[#allocation3 + $0x94] sm:$0xf]  ;;  %v1558_v13 = vld [vmem:[#allocation3 + $0x98] sm:$0xf0] }
  0x22   :  { %685 = vmatpush.bf16.msra.mxu0 %v1866_v14  ;;  %1889 = vmatpush.bf16.msra.mxu2 %v1866_v14  ;;  %v1652_v14 = vld [vmem:[#allocation3 + $0x150] sm:$0xf] }
  0x23   :  { %854 = vmatpush.bf16.msra.mxu1 %v1874_v15  ;;  %1897 = vmatpush.bf16.msra.mxu3 %v1874_v15  ;;  %v1845_v15 = vld [vmem:[#allocation3 + $0x154] sm:$0xf0] }
  0x24   :  { %v1653_v21 = vor.u32 %v1845_v15, %v1652_v14  ;;  %v1852_v15 = vld [vmem:[#allocation3 + $0x194] sm:$0xf] }
  0x25   :  { %686 = vmatmul.bf16.vlgmr.msra.gmra.mxu0 %v1485_v24  ;;  %766 = vmatmul.bf16.vlgmr.msra.gmra.mxu2 %v1613_v25  ;;  %v1532_v24 = vld [vmem:[#allocation3 + $0x60] sm:$0xf]  ;;  %v1815_v25 = vld [vmem:[#allocation3 + $0x64] sm:$0xf0] }
  0x26   :  { %855 = vmatmul.bf16.vlgmr.msra.gmra.mxu1 %v1489_v26  ;;  %935 = vmatmul.bf16.vlgmr.msra.gmra.mxu3 %v1617_v27  ;;  %v1660_v26 = vld [vmem:[#allocation3 + $0x160] sm:$0xf]  ;;  %v1847_v27 = vld [vmem:[#allocation3 + $0x164] sm:$0xf0]  ;;  %v1533_v32 = vor.u32 %v1815_v25, %v1532_v24  ;;  %v1561_v24 = vor.u32 %v1820_v12, %v1558_v13  ;;  %v1689_v25 = vor.u32 %v1852_v15, %v1686_v16 }
  0x27   :  { %v1661_v33 = vor.u32 %v1847_v27, %v1660_v26 }
  0x35   :  { %691 = vmatmul.bf16.gmra.mxu0 %v1493_v36  ;;  %771 = vmatmul.bf16.gmra.mxu2 %v1621_v37  ;;  %v1935_v36 = vmov 0.0   ;;  %v1540_v37 = vld [vmem:[#allocation3 + $0x70] sm:$0xf] }
  0x36   :  { %860 = vmatmul.bf16.gmra.mxu1 %v1497_v38  ;;  %940 = vmatmul.bf16.gmra.mxu3 %v1625_v39  ;;  %38 = vst.msk [vmem:[#allocation2] sm:$0xff] %vm37_vm0, %v1935_v36  ;;  %v1817_v38 = vld [vmem:[#allocation3 + $0x74] sm:$0xf0]  ;;  %v1668_v39 = vld [vmem:[#allocation3 + $0x170] sm:$0xf] }
  0x37   :  { %39 = vst.msk [vmem:[#allocation2 + $0x8] sm:$0xff] %vm37_vm0, %v1935_v36  ;;  %v1541_v45 = vor.u32 %v1817_v38, %v1540_v37  ;;  %v1669_v46 = vor.u32 %v1849_v40, %v1668_v39  ;;  %v1855_v37 = vld [vmem:[#allocation3 + $0x1a4] sm:$0xf0]  ;;  %v1822_v40 = vld [vmem:[#allocation3 + $0xa4] sm:$0xf] }
  0x38   :  { %40 = vst.msk [vmem:[#allocation2 + $0x10] sm:$0xff] %vm37_vm0, %v1935_v36 }
  0x39   :  { %41 = vst.msk [vmem:[#allocation2 + $0x18] sm:$0xff] %vm37_vm0, %v1935_v36 }
  0x3a   :  { %42 = vst.msk [vmem:[#allocation2 + $0x20] sm:$0xff] %vm37_vm0, %v1935_v36 }
  0x3b   :  { %43 = vst.msk [vmem:[#allocation2 + $0x28] sm:$0xff] %vm37_vm0, %v1935_v36 }
  0x3c   :  { %44 = vst.msk [vmem:[#allocation2 + $0x30] sm:$0xff] %vm37_vm0, %v1935_v36 }
  0x3d   :  { %45 = vst.msk [vmem:[#allocation2 + $0x38] sm:$0xff] %vm37_vm0, %v1935_v36 }
  0x3e   :  { %46 = vst.msk [vmem:[#allocation2 + $0x40] sm:$0xff] %vm37_vm0, %v1935_v36  ;;  %v103_v42 = vld [vmem:[#allocation2 + $0x8] sm:$0xff] }
  0x3f   :  { %47 = vst.msk [vmem:[#allocation2 + $0x48] sm:$0xff] %vm37_vm0, %v1935_v36 }
  0x40   :  { %48 = vst.msk [vmem:[#allocation2 + $0x50] sm:$0xff] %vm37_vm0, %v1935_v36 }
  0x41   :  { %49 = vst.msk [vmem:[#allocation2 + $0x58] sm:$0xff] %vm37_vm0, %v1935_v36 }
  0x42   :  { %50 = vst.msk [vmem:[#allocation2 + $0x60] sm:$0xff] %vm37_vm0, %v1935_v36  ;;  %v107_v15 = vld [vmem:[#allocation2 + $0x28] sm:$0xff] }
  0x43   :  { %51 = vst.msk [vmem:[#allocation2 + $0x68] sm:$0xff] %vm37_vm0, %v1935_v36 }
  0x44   :  { %52 = vst.msk [vmem:[#allocation2 + $0x70] sm:$0xff] %vm37_vm0, %v1935_v36 }
  0x45   :  { %696 = vmatmul.bf16.gmra.mxu0 %v1501_v48  ;;  %776 = vmatmul.bf16.gmra.mxu2 %v1629_v49  ;;  %v1673_v48 = vor.u32 %v1848_v43, %v1670_v44  ;;  %53 = vst.msk [vmem:[#allocation2 + $0x78] sm:$0xff] %vm37_vm0, %v1935_v36  ;;  %v1548_v49 = vld [vmem:[#allocation3 + $0x80] sm:$0xf]  ;;  %v1854_v44 = vld [vmem:[#allocation3 + $0x1a4] sm:$0xf] }
  0x46   :  { %865 = vmatmul.bf16.gmra.mxu1 %v1505_v50  ;;  %945 = vmatmul.bf16.gmra.mxu3 %v1633_v51  ;;  %54 = vst.msk [vmem:[#allocation2 + $0x80] sm:$0xff] %vm37_vm0, %v1935_v36  ;;  %v1819_v50 = vld [vmem:[#allocation3 + $0x84] sm:$0xf0]  ;;  %v1676_v51 = vld [vmem:[#allocation3 + $0x180] sm:$0xf] }
  0x47   :  { %55 = vst.msk [vmem:[#allocation2 + $0x88] sm:$0xff] %vm37_vm0, %v1935_v36  ;;  %v1549_v57 = vor.u32 %v1819_v50, %v1548_v49  ;;  %v1677_v58 = vor.u32 %v1851_v52, %v1676_v51  ;;  %v104_v50 = vld [vmem:[#allocation2 + $0x10] sm:$0xff] }
  0x48   :  { %56 = vst.msk [vmem:[#allocation2 + $0x90] sm:$0xff] %vm37_vm0, %v1935_v36 }
  0x49   :  { %57 = vst.msk [vmem:[#allocation2 + $0x98] sm:$0xff] %vm37_vm0, %v1935_v36 }
  0x4a   :  { %58 = vst.msk [vmem:[#allocation2 + $0xa0] sm:$0xff] %vm37_vm0, %v1935_v36 }
  0x4b   :  { %59 = vst.msk [vmem:[#allocation2 + $0xa8] sm:$0xff] %vm37_vm0, %v1935_v36 }
  0x4c   :  { %60 = vst.msk [vmem:[#allocation2 + $0xb0] sm:$0xff] %vm37_vm0, %v1935_v36 }
  0x4d   :  { %61 = vst.msk [vmem:[#allocation2 + $0xb8] sm:$0xff] %vm37_vm0, %v1935_v36 }
  0x4e   :  { %62 = vst.msk [vmem:[#allocation2 + $0xc0] sm:$0xff] %vm37_vm0, %v1935_v36 }
  0x4f   :  { %63 = vst.msk [vmem:[#allocation2 + $0xc8] sm:$0xff] %vm37_vm0, %v1935_v36 }
  0x50   :  { %64 = vst.msk [vmem:[#allocation2 + $0xd0] sm:$0xff] %vm37_vm0, %v1935_v36 }
  0x51   :  { %65 = vst.msk [vmem:[#allocation2 + $0xd8] sm:$0xff] %vm37_vm0, %v1935_v36 }
  0x52   :  { %66 = vst.msk [vmem:[#allocation2 + $0xe0] sm:$0xff] %vm37_vm0, %v1935_v36 }
  0x53   :  { %67 = vst.msk [vmem:[#allocation2 + $0xe8] sm:$0xff] %vm37_vm0, %v1935_v36 }
  0x54   :  { %68 = vst.msk [vmem:[#allocation2 + $0xf0] sm:$0xff] %vm37_vm0, %v1935_v36 }
  0x55   :  { %701 = vmatmul.bf16.gmra.mxu0 %v1509_v60  ;;  %781 = vmatmul.bf16.gmra.mxu2 %v1637_v61  ;;  %69 = vst.msk [vmem:[#allocation2 + $0xf8] sm:$0xff] %vm37_vm0, %v1935_v36  ;;  %v1553_v60 = vor.u32 %v1818_v53, %v1550_v54  ;;  %v1681_v61 = vor.u32 %v1850_v55, %v1678_v56 }
  0x56   :  { %870 = vmatmul.bf16.gmra.mxu1 %v1513_v62  ;;  %950 = vmatmul.bf16.gmra.mxu3 %v1641_v63  ;;  %v102_v62 = vld [vmem:[#allocation2] sm:$0xff]  ;;  %70 = vst.msk [vmem:[#allocation2 + $0x100] sm:$0xff] %vm37_vm0, %v1935_v36 }
  0x57   :  { %71 = vst.msk [vmem:[#allocation2 + $0x108] sm:$0xff] %vm37_vm0, %v1935_v36 }
  0x58   :  { %72 = vst.msk [vmem:[#allocation2 + $0x110] sm:$0xff] %vm37_vm0, %v1935_v36 }
  0x59   :  { %73 = vst.msk [vmem:[#allocation2 + $0x118] sm:$0xff] %vm37_vm0, %v1935_v36 }
  0x5a   :  { %74 = vst.msk [vmem:[#allocation2 + $0x120] sm:$0xff] %vm37_vm0, %v1935_v36 }
  0x5b   :  { %75 = vst.msk [vmem:[#allocation2 + $0x128] sm:$0xff] %vm37_vm0, %v1935_v36 }
  0x5c   :  { %76 = vst.msk [vmem:[#allocation2 + $0x130] sm:$0xff] %vm37_vm0, %v1935_v36 }
  0x5d   :  { %77 = vst.msk [vmem:[#allocation2 + $0x138] sm:$0xff] %vm37_vm0, %v1935_v36  ;;  %v134_v38 = vld [vmem:[#allocation2 + $0x100] sm:$0xff] }
  0x5e   :  { %78 = vst.msk [vmem:[#allocation2 + $0x140] sm:$0xff] %vm37_vm0, %v1935_v36 }
  0x5f   :  { %79 = vst.msk [vmem:[#allocation2 + $0x148] sm:$0xff] %vm37_vm0, %v1935_v36  ;;  %v136_v56 = vld [vmem:[#allocation2 + $0x110] sm:$0xff] }
  0x60   :  { %80 = vst.msk [vmem:[#allocation2 + $0x150] sm:$0xff] %vm37_vm0, %v1935_v36 }
  0x61   :  { %81 = vst.msk [vmem:[#allocation2 + $0x158] sm:$0xff] %vm37_vm0, %v1935_v36 }
  0x62   :  { %82 = vst.msk [vmem:[#allocation2 + $0x160] sm:$0xff] %vm37_vm0, %v1935_v36 }
  0x63   :  { %83 = vst.msk [vmem:[#allocation2 + $0x168] sm:$0xff] %vm37_vm0, %v1935_v36 }
  0x64   :  { %84 = vst.msk [vmem:[#allocation2 + $0x170] sm:$0xff] %vm37_vm0, %v1935_v36 }
  0x65   :  { %706 = vmatmul.bf16.gmra.mxu0 %v1517_v8  ;;  %786 = vmatmul.bf16.gmra.mxu2 %v1645_v9  ;;  %v1556_v8 = vld [vmem:[#allocation3 + $0x90] sm:$0xf]  ;;  %v1821_v9 = vld [vmem:[#allocation3 + $0x94] sm:$0xf0]  ;;  %85 = vst.msk [vmem:[#allocation2 + $0x178] sm:$0xff] %vm37_vm0, %v1935_v36 }
  0x66   :  { %875 = vmatmul.bf16.gmra.mxu1 %v1521_v10  ;;  %955 = vmatmul.bf16.gmra.mxu3 %v1649_v11  ;;  %v1684_v10 = vld [vmem:[#allocation3 + $0x190] sm:$0xf]  ;;  %v1853_v11 = vld [vmem:[#allocation3 + $0x194] sm:$0xf0]  ;;  %86 = vst.msk [vmem:[#allocation2 + $0x180] sm:$0xff] %vm37_vm0, %v1935_v36 }
  0x67   :  { %87 = vst.msk [vmem:[#allocation2 + $0x188] sm:$0xff] %vm37_vm0, %v1935_v36 }
  0x68   :  { %88 = vst.msk [vmem:[#allocation2 + $0x190] sm:$0xff] %vm37_vm0, %v1935_v36 }
  0x69   :  { %89 = vst.msk [vmem:[#allocation2 + $0x198] sm:$0xff] %vm37_vm0, %v1935_v36 }
  0x6a   :  { %90 = vst.msk [vmem:[#allocation2 + $0x1a0] sm:$0xff] %vm37_vm0, %v1935_v36 }
  0x6b   :  { %91 = vst.msk [vmem:[#allocation2 + $0x1a8] sm:$0xff] %vm37_vm0, %v1935_v36 }
  0x6c   :  { %92 = vst.msk [vmem:[#allocation2 + $0x1b0] sm:$0xff] %vm37_vm0, %v1935_v36 }
  0x6d   :  { %93 = vst.msk [vmem:[#allocation2 + $0x1b8] sm:$0xff] %vm37_vm0, %v1935_v36 }
  0x6e   :  { %94 = vst.msk [vmem:[#allocation2 + $0x1c0] sm:$0xff] %vm37_vm0, %v1935_v36 }
  0x6f   :  { %95 = vst.msk [vmem:[#allocation2 + $0x1c8] sm:$0xff] %vm37_vm0, %v1935_v36 }
  0x70   :  { %96 = vst.msk [vmem:[#allocation2 + $0x1d0] sm:$0xff] %vm37_vm0, %v1935_v36 }
  0x71   :  { %97 = vst.msk [vmem:[#allocation2 + $0x1d8] sm:$0xff] %vm37_vm0, %v1935_v36 }
  0x72   :  { %98 = vst.msk [vmem:[#allocation2 + $0x1e0] sm:$0xff] %vm37_vm0, %v1935_v36 }
  0x73   :  { %99 = vst.msk [vmem:[#allocation2 + $0x1e8] sm:$0xff] %vm37_vm0, %v1935_v36 }
  0x74   :  { %100 = vst.msk [vmem:[#allocation2 + $0x1f0] sm:$0xff] %vm37_vm0, %v1935_v36 }
  0x75   :  { %711 = vmatmul.bf16.gmra.mxu0 %v1525_v20  ;;  %791 = vmatmul.bf16.gmra.mxu2 %v1653_v21  ;;  %v1557_v20 = vor.u32 %v1821_v9, %v1556_v8  ;;  %v1685_v21 = vor.u32 %v1853_v11, %v1684_v10  ;;  %101 = vst.msk [vmem:[#allocation2 + $0x1f8] sm:$0xff] %vm37_vm0, %v1935_v36  ;;  %v138_v11 = vld [vmem:[#allocation2 + $0x120] sm:$0xff] }
  0x76   :  { %880 = vmatmul.bf16.gmra.mxu1 %v1529_v22  ;;  %960 = vmatmul.bf16.gmra.mxu3 %v1657_v23 }
  0x85   :  { %716 = vmatmul.bf16.gmra.mxu0 %v1533_v32  ;;  %796 = vmatmul.bf16.gmra.mxu2 %v1661_v33  ;;  %v1564_v32 = vld [vmem:[#allocation3 + $0xa0] sm:$0xf]  ;;  %v1823_v33 = vld [vmem:[#allocation3 + $0xa4] sm:$0xf0] }
  0x86   :  { %885 = vmatmul.bf16.gmra.mxu1 %v1537_v34  ;;  %965 = vmatmul.bf16.gmra.mxu3 %v1665_v35  ;;  %v1692_v35 = vld [vmem:[#allocation3 + $0x1a0] sm:$0xf]  ;;  %v1565_v53 = vor.u32 %v1823_v33, %v1564_v32 }
  0x87   :  { %v1693_v54 = vor.u32 %v1855_v37, %v1692_v35  ;;  %v1702_v35 = vld [vmem:[#allocation3 + $0x1b8] sm:$0xf0] }
  0x95   :  { %721 = vmatmul.bf16.gmra.mxu0 %v1541_v45  ;;  %801 = vmatmul.bf16.gmra.mxu2 %v1669_v46  ;;  %v1694_v45 = vld [vmem:[#allocation3 + $0x1a8] sm:$0xf0] }
  0x96   :  { %890 = vmatmul.bf16.gmra.mxu1 %v1545_v47  ;;  %970 = vmatmul.bf16.gmra.mxu3 %v1673_v48  ;;  %v135_v46 = vld [vmem:[#allocation2 + $0x108] sm:$0xff] }
  0xa2   :  { %v687_v59 = vpop.f32.mrf.mxu0 }
  0xa3   :  { %v856_v63 = vpop.f32.mrf.mxu1 }
  0xa4   :  { %v857_v0 = vadd.f32 %v856_v63, %v687_v59  ;;  %v1569_v59 = vor.u32 %v1822_v40, %v1566_v41 }
  0xa5   :  { %726 = vmatmul.bf16.gmra.mxu0 %v1549_v57  ;;  %806 = vmatmul.bf16.gmra.mxu2 %v1677_v58 }
  0xa6   :  { %v1016_v1 = vadd.f32 %v857_v0, %v102_v62  ;;  %895 = vmatmul.bf16.gmra.mxu1 %v1553_v60  ;;  %975 = vmatmul.bf16.gmra.mxu3 %v1681_v61  ;;  %v1697_v60 = vor.u32 %v1854_v44, %v1694_v45  ;;  %v105_v62 = vld [vmem:[#allocation2 + $0x18] sm:$0xff] }
  0xa8   :  { %1081 = vst.msk [vmem:[#allocation2] sm:$0xff] %vm37_vm0, %v1016_v1  ;;  %v767_v2 = vpop.f32.mrf.mxu2 }
  0xa9   :  { %v936_v3 = vpop.f32.mrf.mxu3 }
  0xaa   :  { %v689_v4 = vpop.f32.mrf.mxu0  ;;  %v937_v34 = vadd.f32 %v936_v3, %v767_v2  ;;  %v137_v2 = vld [vmem:[#allocation2 + $0x118] sm:$0xff] }
  0xab   :  { %v858_v6 = vpop.f32.mrf.mxu1 }
  0xac   :  { %v859_v39 = vadd.f32 %v858_v6, %v689_v4  ;;  %v1048_v49 = vadd.f32 %v937_v34, %v134_v38  ;;  %v106_v6 = vld [vmem:[#allocation2 + $0x20] sm:$0xff]  ;;  %v1856_v34 = vld [vmem:[#allocation3 + $0x1b4] sm:$0xf] }
  0xae   :  { %v1017_v55 = vadd.f32 %v859_v39, %v103_v42  ;;  %1113 = vst.msk [vmem:[#allocation2 + $0x100] sm:$0xff] %vm37_vm0, %v1048_v49 }
  0xaf   :  { %v1148_v14 = vld [vmem:[#allocation2] sm:$0xff] }
  0xb0   :  { %v1216_v17 = vmul.f32 %v2094_v5, %v1148_v14  ;;  %v769_v18 = vpop.f32.mrf.mxu2  ;;  %1082 = vst.msk [vmem:[#allocation2 + $0x8] sm:$0xff] %vm37_vm0, %v1017_v55 }
  0xb1   :  { %v938_v19 = vpop.f32.mrf.mxu3 }
  0xb2   :  { %v1284_v22 = vadd.f32 %v2101_v7, %v1216_v17  ;;  %v692_v23 = vpop.f32.mrf.mxu0  ;;  %v939_v43 = vadd.f32 %v938_v19, %v769_v18 }
  0xb3   :  { %v861_v26 = vpop.f32.mrf.mxu1 }
  0xb4   :  { %v1348_v27 = vpack.c.bf16 %v1284_v22, %v1284_v22  ;;  %v862_v47 = vadd.f32 %v861_v26, %v692_v23  ;;  %v1049_v61 = vadd.f32 %v939_v43, %v135_v46 }
  0xb5   :  { %731 = vmatmul.bf16.gmra.mxu0 %v1557_v20  ;;  %811 = vmatmul.bf16.gmra.mxu2 %v1685_v21  ;;  %v1180_v17 = vld [vmem:[#allocation2 + $0x100] sm:$0xff]  ;;  %v1572_v20 = vld [vmem:[#allocation3 + $0xb0] sm:$0xf]  ;;  %v1825_v21 = vld [vmem:[#allocation3 + $0xb4] sm:$0xf0] }
  0xb6   :  { %1413 = vst.msk [vmem:[%s2612_s4] sm:$0xf] %vm1412_vm1, %v1348_v27  ;;  %900 = vmatmul.bf16.gmra.mxu1 %v1561_v24  ;;  %980 = vmatmul.bf16.gmra.mxu3 %v1689_v25  ;;  %v1018_v1 = vadd.f32 %v862_v47, %v104_v50  ;;  %v1248_v22 = vmul.f32 %v2094_v5, %v1180_v17  ;;  %v1700_v24 = vld [vmem:[#allocation3 + $0x1b0] sm:$0xf]  ;;  %v1857_v25 = vld [vmem:[#allocation3 + $0x1b4] sm:$0xf0] }
  0xb7   :  { %1114 = vst.msk [vmem:[#allocation2 + $0x108] sm:$0xff] %vm37_vm0, %v1049_v61  ;;  %v1149_v23 = vld [vmem:[#allocation2 + $0x8] sm:$0xff]  ;;  %v1573_v41 = vor.u32 %v1825_v21, %v1572_v20  ;;  %v1701_v42 = vor.u32 %v1857_v25, %v1700_v24  ;;  %v109_v24 = vld [vmem:[#allocation2 + $0x38] sm:$0xff] }
  0xb8   :  { %v772_v28 = vpop.f32.mrf.mxu2  ;;  %1083 = vst.msk [vmem:[#allocation2 + $0x10] sm:$0xff] %vm37_vm0, %v1018_v1  ;;  %v1217_v26 = vmul.f32 %v2094_v5, %v1149_v23 }
  0xb9   :  { %v941_v29 = vpop.f32.mrf.mxu3 }
  0xba   :  { %v694_v30 = vpop.f32.mrf.mxu0  ;;  %v942_v51 = vadd.f32 %v941_v29, %v772_v28  ;;  %v1824_v29 = vld [vmem:[#allocation3 + $0xb4] sm:$0xf]  ;;  %v1285_v37 = vadd.f32 %v2101_v7, %v1217_v26 }
  0xbb   :  { %v863_v31 = vpop.f32.mrf.mxu1 }
  0xbc   :  { %v864_v57 = vadd.f32 %v863_v31, %v694_v30  ;;  %v1050_v4 = vadd.f32 %v942_v51, %v136_v56  ;;  %v1574_v30 = vld [vmem:[#allocation3 + $0xb8] sm:$0xf0]  ;;  %v1316_v31 = vadd.f32 %v2101_v7, %v1248_v22  ;;  %v1349_v49 = vpack.c.bf16 %v1285_v37, %v1285_v37  ;;  %v1858_v37 = vld [vmem:[#allocation3 + $0x1c4] sm:$0xf] }
  0xbe   :  { %v1019_v8 = vadd.f32 %v864_v57, %v105_v62  ;;  %1115 = vst.msk [vmem:[#allocation2 + $0x110] sm:$0xff] %vm37_vm0, %v1050_v4  ;;  %v1181_v27 = vld [vmem:[#allocation2 + $0x108] sm:$0xff]  ;;  %v1380_v43 = vpack.c.bf16 %v1316_v31, %v1316_v31  ;;  %v1708_v31 = vld [vmem:[#allocation3 + $0x1c0] sm:$0xf] }
  0xbf   :  { %v1249_v32 = vmul.f32 %v2094_v5, %v1181_v27  ;;  %v1150_v33 = vld [vmem:[#allocation2 + $0x10] sm:$0xff]  ;;  %1414 = vst.msk [vmem:[%s2612_s4 + $0x4] sm:$0xf] %vm1412_vm1, %v1349_v49 }
  0xc0   :  { %v774_v48 = vpop.f32.mrf.mxu2  ;;  %1084 = vst.msk [vmem:[#allocation2 + $0x18] sm:$0xff] %vm37_vm0, %v1019_v8  ;;  %v1218_v38 = vmul.f32 %v2094_v5, %v1150_v33 }
  0xc1   :  { %v943_v52 = vpop.f32.mrf.mxu3  ;;  %v1317_v44 = vadd.f32 %v2101_v7, %v1249_v32  ;;  %1445 = vst.msk [vmem:[%s2612_s4 + $0x80] sm:$0xf] %vm1412_vm1, %v1380_v43  ;;  %v1859_v32 = vld [vmem:[#allocation3 + $0x1c4] sm:$0xf0] }
  0xc2   :  { %v697_v58 = vpop.f32.mrf.mxu0  ;;  %v944_v63 = vadd.f32 %v943_v52, %v774_v48  ;;  %v1577_v48 = vor.u32 %v1824_v29, %v1574_v30  ;;  %v1286_v50 = vadd.f32 %v2101_v7, %v1218_v38  ;;  %v1580_v29 = vld [vmem:[#allocation3 + $0xc0] sm:$0xf]  ;;  %v1827_v30 = vld [vmem:[#allocation3 + $0xc4] sm:$0xf0]  ;;  %v1710_v38 = vld [vmem:[#allocation3 + $0x1c8] sm:$0xf0]  ;;  %v1709_v43 = vor.u32 %v1859_v32, %v1708_v31 }
  0xc3   :  { %v866_v0 = vpop.f32.mrf.mxu1  ;;  %v1381_v55 = vpack.c.bf16 %v1317_v44, %v1317_v44 }
  0xc4   :  { %v867_v3 = vadd.f32 %v866_v0, %v697_v58  ;;  %v1051_v9 = vadd.f32 %v944_v63, %v137_v2  ;;  %v1350_v61 = vpack.c.bf16 %v1286_v50, %v1286_v50  ;;  %v139_v0 = vld [vmem:[#allocation2 + $0x128] sm:$0xff]  ;;  %v110_v50 = vld [vmem:[#allocation2 + $0x40] sm:$0xff] }
  0xc5   :  { %736 = vmatmul.bf16.gmra.mxu0 %v1565_v53  ;;  %816 = vmatmul.bf16.gmra.mxu2 %v1693_v54  ;;  %v1182_v39 = vld [vmem:[#allocation2 + $0x110] sm:$0xff]  ;;  %v1705_v54 = vor.u32 %v1856_v34, %v1702_v35  ;;  %1446 = vst.msk [vmem:[%s2612_s4 + $0x84] sm:$0xf] %vm1412_vm1, %v1381_v55  ;;  %v1826_v34 = vld [vmem:[#allocation3 + $0xc4] sm:$0xf] }
  0xc6   :  { %905 = vmatmul.bf16.gmra.mxu1 %v1569_v59  ;;  %985 = vmatmul.bf16.gmra.mxu3 %v1697_v60  ;;  %v1020_v36 = vadd.f32 %v867_v3, %v106_v6  ;;  %1116 = vst.msk [vmem:[#allocation2 + $0x118] sm:$0xff] %vm37_vm0, %v1051_v9  ;;  %v1250_v45 = vmul.f32 %v2094_v5, %v1182_v39  ;;  %v1582_v35 = vld [vmem:[#allocation3 + $0xc8] sm:$0xf0] }
  0xc7   :  { %v1151_v46 = vld [vmem:[#allocation2 + $0x18] sm:$0xff]  ;;  %1415 = vst.msk [vmem:[%s2612_s4 + $0x8] sm:$0xf] %vm1412_vm1, %v1350_v61 }
  0xc8   :  { %v777_v10 = vpop.f32.mrf.mxu2  ;;  %1085 = vst.msk [vmem:[#allocation2 + $0x20] sm:$0xff] %vm37_vm0, %v1020_v36  ;;  %v1219_v51 = vmul.f32 %v2094_v5, %v1151_v46  ;;  %v1318_v56 = vadd.f32 %v2101_v7, %v1250_v45  ;;  %v108_v36 = vld [vmem:[#allocation2 + $0x30] sm:$0xff] }
  0xc9   :  { %v946_v12 = vpop.f32.mrf.mxu3 }
  0xca   :  { %v947_v13 = vadd.f32 %v946_v12, %v777_v10  ;;  %v699_v14 = vpop.f32.mrf.mxu0  ;;  %v1287_v62 = vadd.f32 %v2101_v7, %v1219_v51  ;;  %v1382_v1 = vpack.c.bf16 %v1318_v56, %v1318_v56 }
  0xcb   :  { %v868_v16 = vpop.f32.mrf.mxu1 }
  0xcc   :  { %v1052_v18 = vadd.f32 %v947_v13, %v138_v11  ;;  %v869_v19 = vadd.f32 %v868_v16, %v699_v14  ;;  %v1351_v6 = vpack.c.bf16 %v1287_v62, %v1287_v62  ;;  %1447 = vst.msk [vmem:[%s2612_s4 + $0x88] sm:$0xf] %vm1412_vm1, %v1382_v1 }
  0xcd   :  { %v1183_v52 = vld [vmem:[#allocation2 + $0x118] sm:$0xff] }
  0xce   :  { %1117 = vst.msk [vmem:[#allocation2 + $0x120] sm:$0xff] %vm37_vm0, %v1052_v18  ;;  %v1021_v28 = vadd.f32 %v869_v19, %v107_v15  ;;  %v1251_v57 = vmul.f32 %v2094_v5, %v1183_v52  ;;  %v140_v18 = vld [vmem:[#allocation2 + $0x130] sm:$0xff] }
  0xcf   :  { %v1152_v58 = vld [vmem:[#allocation2 + $0x20] sm:$0xff]  ;;  %1416 = vst.msk [vmem:[%s2612_s4 + $0xc] sm:$0xf] %vm1412_vm1, %v1351_v6 }
  0xd0   :  { %1086 = vst.msk [vmem:[#allocation2 + $0x28] sm:$0xff] %vm37_vm0, %v1021_v28  ;;  %v779_v40 = vpop.f32.mrf.mxu2  ;;  %v1220_v63 = vmul.f32 %v2094_v5, %v1152_v58  ;;  %v1319_v2 = vadd.f32 %v2101_v7, %v1251_v57 }
  0xd1   :  { %v948_v47 = vpop.f32.mrf.mxu3 }
  0xd2   :  { %v702_v53 = vpop.f32.mrf.mxu0  ;;  %v949_v59 = vadd.f32 %v948_v47, %v779_v40  ;;  %v1288_v8 = vadd.f32 %v2101_v7, %v1220_v63  ;;  %v1383_v10 = vpack.c.bf16 %v1319_v2, %v1319_v2  ;;  %v141_v40 = vld [vmem:[#allocation2 + $0x138] sm:$0xff]  ;;  %v1585_v47 = vor.u32 %v1826_v34, %v1582_v35 }
  0xd3   :  { %v871_v60 = vpop.f32.mrf.mxu1 }
  0xd4   :  { %v872_v4 = vadd.f32 %v871_v60, %v702_v53  ;;  %v1053_v12 = vadd.f32 %v949_v59, %v139_v0  ;;  %v1352_v13 = vpack.c.bf16 %v1288_v8, %v1288_v8  ;;  %1448 = vst.msk [vmem:[%s2612_s4 + $0x8c] sm:$0xf] %vm1412_vm1, %v1383_v10  ;;  %v111_v10 = vld [vmem:[#allocation2 + $0x48] sm:$0xff] }
  0xd5   :  { %v1184_v3 = vld [vmem:[#allocation2 + $0x120] sm:$0xff]  ;;  %741 = vmatmul.bf16.gmra.mxu0 %v1573_v41  ;;  %821 = vmatmul.bf16.gmra.mxu2 %v1701_v42  ;;  %v1581_v42 = vor.u32 %v1827_v30, %v1580_v29  ;;  %v143_v30 = vld [vmem:[#allocation2 + $0x148] sm:$0xff] }
  0xd6   :  { %v1252_v9 = vmul.f32 %v2094_v5, %v1184_v3  ;;  %910 = vmatmul.bf16.gmra.mxu1 %v1577_v48  ;;  %990 = vmatmul.bf16.gmra.mxu3 %v1705_v54  ;;  %v1022_v17 = vadd.f32 %v872_v4, %v108_v36  ;;  %1417 = vst.msk [vmem:[%s2612_s4 + $0x10] sm:$0xf] %vm1412_vm1, %v1352_v13  ;;  %v142_v3 = vld [vmem:[#allocation2 + $0x140] sm:$0xff] }
  0xd7   :  { %v1153_v11 = vld [vmem:[#allocation2 + $0x28] sm:$0xff]  ;;  %1118 = vst.msk [vmem:[#allocation2 + $0x128] sm:$0xff] %vm37_vm0, %v1053_v12  ;;  %v1713_v48 = vor.u32 %v1858_v37, %v1710_v38 }
  0xd8   :  { %v1320_v14 = vadd.f32 %v2101_v7, %v1252_v9  ;;  %v1221_v15 = vmul.f32 %v2094_v5, %v1153_v11  ;;  %v782_v16 = vpop.f32.mrf.mxu2  ;;  %1087 = vst.msk [vmem:[#allocation2 + $0x30] sm:$0xff] %vm37_vm0, %v1022_v17  ;;  %v1716_v17 = vld [vmem:[#allocation3 + $0x1d0] sm:$0xf] }
  0xd9   :  { %v951_v19 = vpop.f32.mrf.mxu3 }
  0xda   :  { %v1384_v20 = vpack.c.bf16 %v1320_v14, %v1320_v14  ;;  %v1289_v21 = vadd.f32 %v2101_v7, %v1221_v15  ;;  %v952_v22 = vadd.f32 %v951_v19, %v782_v16  ;;  %v704_v23 = vpop.f32.mrf.mxu0  ;;  %v1588_v15 = vld [vmem:[#allocation3 + $0xd0] sm:$0xf]  ;;  %v1829_v16 = vld [vmem:[#allocation3 + $0xd4] sm:$0xf0] }
  0xdb   :  { %v873_v25 = vpop.f32.mrf.mxu1  ;;  %v1861_v19 = vld [vmem:[#allocation3 + $0x1d4] sm:$0xf0]  ;;  %v1589_v32 = vor.u32 %v1829_v16, %v1588_v15 }
  0xdc   :  { %1449 = vst.msk [vmem:[%s2612_s4 + $0x90] sm:$0xf] %vm1412_vm1, %v1384_v20  ;;  %v1353_v26 = vpack.c.bf16 %v1289_v21, %v1289_v21  ;;  %v1054_v27 = vadd.f32 %v952_v22, %v140_v18  ;;  %v874_v28 = vadd.f32 %v873_v25, %v704_v23  ;;  %v1828_v22 = vld [vmem:[#allocation3 + $0xd4] sm:$0xf]  ;;  %v1590_v23 = vld [vmem:[#allocation3 + $0xd8] sm:$0xf0] }
  0xdd   :  { %v1860_v25 = vld [vmem:[#allocation3 + $0x1d4] sm:$0xf]  ;;  %v1593_v34 = vor.u32 %v1828_v22, %v1590_v23  ;;  %v145_v16 = vld [vmem:[#allocation2 + $0x158] sm:$0xff] }
  0xde   :  { %1418 = vst.msk [vmem:[%s2612_s4 + $0x14] sm:$0xf] %vm1412_vm1, %v1353_v26  ;;  %v1023_v33 = vadd.f32 %v874_v28, %v109_v24  ;;  %v1185_v44 = vld [vmem:[#allocation2 + $0x128] sm:$0xff]  ;;  %v1718_v26 = vld [vmem:[#allocation3 + $0x1d8] sm:$0xf0] }
  0xdf   :  { %1119 = vst.msk [vmem:[#allocation2 + $0x130] sm:$0xff] %vm37_vm0, %v1054_v27  ;;  %v1253_v49 = vmul.f32 %v2094_v5, %v1185_v44  ;;  %v1154_v52 = vld [vmem:[#allocation2 + $0x30] sm:$0xff] }
  0xe0   :  { %1088 = vst.msk [vmem:[#allocation2 + $0x38] sm:$0xff] %vm37_vm0, %v1023_v33  ;;  %v784_v39 = vpop.f32.mrf.mxu2  ;;  %v1222_v56 = vmul.f32 %v2094_v5, %v1154_v52  ;;  %v1717_v33 = vor.u32 %v1861_v19, %v1716_v17 }
  0xe1   :  { %v953_v41 = vpop.f32.mrf.mxu3  ;;  %v1321_v55 = vadd.f32 %v2101_v7, %v1253_v49 }
  0xe2   :  { %v954_v45 = vadd.f32 %v953_v41, %v784_v39  ;;  %v707_v46 = vpop.f32.mrf.mxu0  ;;  %v1290_v60 = vadd.f32 %v2101_v7, %v1222_v56  ;;  %v112_v41 = vld [vmem:[#allocation2 + $0x50] sm:$0xff] }
  0xe3   :  { %v876_v51 = vpop.f32.mrf.mxu1  ;;  %v1385_v59 = vpack.c.bf16 %v1321_v55, %v1321_v55 }
  0xe4   :  { %v1055_v53 = vadd.f32 %v954_v45, %v141_v40  ;;  %v877_v54 = vadd.f32 %v876_v51, %v707_v46  ;;  %v1354_v1 = vpack.c.bf16 %v1290_v60, %v1290_v60  ;;  %v1721_v40 = vor.u32 %v1860_v25, %v1718_v26  ;;  %v114_v26 = vld [vmem:[#allocation2 + $0x60] sm:$0xff] }
  0xe5   :  { %746 = vmatmul.bf16.gmra.mxu0 %v1581_v42  ;;  %826 = vmatmul.bf16.gmra.mxu2 %v1709_v43  ;;  %1450 = vst.msk [vmem:[%s2612_s4 + $0x94] sm:$0xf] %vm1412_vm1, %v1385_v59  ;;  %v113_v59 = vld [vmem:[#allocation2 + $0x58] sm:$0xff] }
  0xe6   :  { %v1186_v57 = vld [vmem:[#allocation2 + $0x130] sm:$0xff]  ;;  %1120 = vst.msk [vmem:[#allocation2 + $0x138] sm:$0xff] %vm37_vm0, %v1055_v53  ;;  %v1024_v58 = vadd.f32 %v877_v54, %v110_v50  ;;  %915 = vmatmul.bf16.gmra.mxu1 %v1585_v47  ;;  %995 = vmatmul.bf16.gmra.mxu3 %v1713_v48 }
  0xe7   :  { %v1254_v61 = vmul.f32 %v2094_v5, %v1186_v57  ;;  %v1155_v62 = vld [vmem:[#allocation2 + $0x38] sm:$0xff]  ;;  %1419 = vst.msk [vmem:[%s2612_s4 + $0x18] sm:$0xf] %vm1412_vm1, %v1354_v1  ;;  %v144_v53 = vld [vmem:[#allocation2 + $0x150] sm:$0xff]  ;;  %v1831_v1 = vld [vmem:[#allocation3 + $0xe4] sm:$0xf0] }
  0xe8   :  { %v1223_v63 = vmul.f32 %v2094_v5, %v1155_v62  ;;  %1089 = vst.msk [vmem:[#allocation2 + $0x40] sm:$0xff] %vm37_vm0, %v1024_v58  ;;  %v787_v0 = vpop.f32.mrf.mxu2 }
  0xe9   :  { %v1322_v2 = vadd.f32 %v2101_v7, %v1254_v61  ;;  %v956_v4 = vpop.f32.mrf.mxu3 }
  0xea   :  { %v1291_v6 = vadd.f32 %v2101_v7, %v1223_v63  ;;  %v957_v8 = vadd.f32 %v956_v4, %v787_v0  ;;  %v709_v9 = vpop.f32.mrf.mxu0  ;;  %v1596_v0 = vld [vmem:[#allocation3 + $0xe0] sm:$0xf]  ;;  %v1830_v4 = vld [vmem:[#allocation3 + $0xe4] sm:$0xf] }
  0xeb   :  { %v1386_v36 = vpack.c.bf16 %v1322_v2, %v1322_v2  ;;  %v878_v11 = vpop.f32.mrf.mxu1  ;;  %v1724_v2 = vld [vmem:[#allocation3 + $0x1e0] sm:$0xf] }
  0xec   :  { %v1355_v12 = vpack.c.bf16 %v1291_v6, %v1291_v6  ;;  %v1056_v13 = vadd.f32 %v957_v8, %v142_v3  ;;  %v879_v14 = vadd.f32 %v878_v11, %v709_v9  ;;  %v1863_v3 = vld [vmem:[#allocation3 + $0x1e4] sm:$0xf0]  ;;  %v1598_v9 = vld [vmem:[#allocation3 + $0xe8] sm:$0xf0]  ;;  %v1862_v11 = vld [vmem:[#allocation3 + $0x1e4] sm:$0xf] }
  0xed   :  { %1451 = vst.msk [vmem:[%s2612_s4 + $0x98] sm:$0xf] %vm1412_vm1, %v1386_v36  ;;  %v1187_v18 = vld [vmem:[#allocation2 + $0x138] sm:$0xff]  ;;  %v1725_v19 = vor.u32 %v1863_v3, %v1724_v2  ;;  %v1601_v23 = vor.u32 %v1830_v4, %v1598_v9 }
  0xee   :  { %1420 = vst.msk [vmem:[%s2612_s4 + $0x1c] sm:$0xf] %vm1412_vm1, %v1355_v12  ;;  %v1255_v20 = vmul.f32 %v2094_v5, %v1187_v18  ;;  %v1025_v21 = vadd.f32 %v879_v14, %v111_v10  ;;  %v1726_v12 = vld [vmem:[#allocation3 + $0x1e8] sm:$0xf0]  ;;  %v1597_v18 = vor.u32 %v1831_v1, %v1596_v0 }
  0xef   :  { %v1156_v24 = vld [vmem:[#allocation2 + $0x40] sm:$0xff]  ;;  %1121 = vst.msk [vmem:[#allocation2 + $0x140] sm:$0xff] %vm37_vm0, %v1056_v13  ;;  %v147_v1 = vld [vmem:[#allocation2 + $0x168] sm:$0xff] }
  0xf0   :  { %v1323_v27 = vadd.f32 %v2101_v7, %v1255_v20  ;;  %v1224_v28 = vmul.f32 %v2094_v5, %v1156_v24  ;;  %1090 = vst.msk [vmem:[#allocation2 + $0x48] sm:$0xff] %vm37_vm0, %v1025_v21  ;;  %v789_v29 = vpop.f32.mrf.mxu2  ;;  %v1729_v24 = vor.u32 %v1862_v11, %v1726_v12  ;;  %v116_v12 = vld [vmem:[#allocation2 + $0x70] sm:$0xff] }
  0xf1   :  { %v958_v31 = vpop.f32.mrf.mxu3 }
  0xf2   :  { %v1387_v35 = vpack.c.bf16 %v1323_v27, %v1323_v27  ;;  %v1292_v37 = vadd.f32 %v2101_v7, %v1224_v28  ;;  %v959_v38 = vadd.f32 %v958_v31, %v789_v29  ;;  %v712_v39 = vpop.f32.mrf.mxu0 }
  0xf3   :  { %v881_v42 = vpop.f32.mrf.mxu1 }
  0xf4   :  { %1452 = vst.msk [vmem:[%s2612_s4 + $0x9c] sm:$0xf] %vm1412_vm1, %v1387_v35  ;;  %v1356_v43 = vpack.c.bf16 %v1292_v37, %v1292_v37  ;;  %v1057_v44 = vadd.f32 %v959_v38, %v143_v30  ;;  %v882_v45 = vadd.f32 %v881_v42, %v712_v39  ;;  %v146_v39 = vld [vmem:[#allocation2 + $0x160] sm:$0xff] }
  0xf5   :  { %751 = vmatmul.bf16.gmra.mxu0 %v1589_v32  ;;  %831 = vmatmul.bf16.gmra.mxu2 %v1717_v33 }
  0xf6   :  { %1421 = vst.msk [vmem:[%s2612_s4 + $0x20] sm:$0xf] %vm1412_vm1, %v1356_v43  ;;  %v1188_v46 = vld [vmem:[#allocation2 + $0x140] sm:$0xff]  ;;  %v1026_v47 = vadd.f32 %v882_v45, %v112_v41  ;;  %920 = vmatmul.bf16.gmra.mxu1 %v1593_v34  ;;  %1000 = vmatmul.bf16.gmra.mxu3 %v1721_v40  ;;  %v115_v45 = vld [vmem:[#allocation2 + $0x68] sm:$0xff] }
  0xf7   :  { %v1256_v48 = vmul.f32 %v2094_v5, %v1188_v46  ;;  %v1157_v49 = vld [vmem:[#allocation2 + $0x48] sm:$0xff]  ;;  %1122 = vst.msk [vmem:[#allocation2 + $0x148] sm:$0xff] %vm37_vm0, %v1057_v44 }
  0xf8   :  { %v1225_v50 = vmul.f32 %v2094_v5, %v1157_v49  ;;  %1091 = vst.msk [vmem:[#allocation2 + $0x50] sm:$0xff] %vm37_vm0, %v1026_v47  ;;  %v792_v51 = vpop.f32.mrf.mxu2 }
  0xf9   :  { %v1324_v52 = vadd.f32 %v2101_v7, %v1256_v48  ;;  %v961_v54 = vpop.f32.mrf.mxu3 }
  0xfa   :  { %v1293_v55 = vadd.f32 %v2101_v7, %v1225_v50  ;;  %v962_v56 = vadd.f32 %v961_v54, %v792_v51  ;;  %v714_v57 = vpop.f32.mrf.mxu0  ;;  %v1604_v50 = vld [vmem:[#allocation3 + $0xf0] sm:$0xf]  ;;  %v1833_v51 = vld [vmem:[#allocation3 + $0xf4] sm:$0xf0]  ;;  %v1832_v54 = vld [vmem:[#allocation3 + $0xf4] sm:$0xf] }
  0xfb   :  { %v1388_v58 = vpack.c.bf16 %v1324_v52, %v1324_v52  ;;  %v883_v60 = vpop.f32.mrf.mxu1  ;;  %v1732_v52 = vld [vmem:[#allocation3 + $0x1f0] sm:$0xf]  ;;  %v1605_v3 = vor.u32 %v1833_v51, %v1604_v50 }
  0xfc   :  { %v1357_v61 = vpack.c.bf16 %v1293_v55, %v1293_v55  ;;  %v1058_v62 = vadd.f32 %v962_v56, %v144_v53  ;;  %v884_v63 = vadd.f32 %v883_v60, %v714_v57  ;;  %v1865_v53 = vld [vmem:[#allocation3 + $0x1f4] sm:$0xf0]  ;;  %v1606_v57 = vld [vmem:[#allocation3 + $0xf8] sm:$0xf0]  ;;  %v1864_v60 = vld [vmem:[#allocation3 + $0x1f4] sm:$0xf] }
  0xfd   :  { %1453 = vst.msk [vmem:[%s2612_s4 + $0xa0] sm:$0xf] %vm1412_vm1, %v1388_v58  ;;  %v1733_v4 = vor.u32 %v1865_v53, %v1732_v52 }
  0xfe   :  { %1422 = vst.msk [vmem:[%s2612_s4 + $0x24] sm:$0xf] %vm1412_vm1, %v1357_v61  ;;  %v1189_v6 = vld [vmem:[#allocation2 + $0x148] sm:$0xff]  ;;  %v1027_v8 = vadd.f32 %v884_v63, %v113_v59  ;;  %v1734_v61 = vld [vmem:[#allocation3 + $0x1f8] sm:$0xf0] }
  0xff   :  { %v1257_v36 = vmul.f32 %v2094_v5, %v1189_v6  ;;  %v1158_v10 = vld [vmem:[#allocation2 + $0x50] sm:$0xff]  ;;  %1123 = vst.msk [vmem:[#allocation2 + $0x150] sm:$0xff] %vm37_vm0, %v1058_v62 }
 0x100   :  { %v1226_v13 = vmul.f32 %v2094_v5, %v1158_v10  ;;  %1092 = vst.msk [vmem:[#allocation2 + $0x58] sm:$0xff] %vm37_vm0, %v1027_v8  ;;  %v794_v14 = vpop.f32.mrf.mxu2  ;;  %v1737_v10 = vor.u32 %v1864_v60, %v1734_v61  ;;  %v150_v61 = vld [vmem:[#allocation2 + $0x180] sm:$0xff] }
 0x101   :  { %v1325_v15 = vadd.f32 %v2101_v7, %v1257_v36  ;;  %v963_v17 = vpop.f32.mrf.mxu3  ;;  %v1609_v36 = vor.u32 %v1832_v54, %v1606_v57 }
 0x102   :  { %v1294_v20 = vadd.f32 %v2101_v7, %v1226_v13  ;;  %v964_v21 = vadd.f32 %v963_v17, %v794_v14  ;;  %v717_v22 = vpop.f32.mrf.mxu0 }
 0x103   :  { %v1389_v25 = vpack.c.bf16 %v1325_v15, %v1325_v15  ;;  %v886_v27 = vpop.f32.mrf.mxu1 }
 0x104   :  { %v1358_v28 = vpack.c.bf16 %v1294_v20, %v1294_v20  ;;  %v1059_v29 = vadd.f32 %v964_v21, %v145_v16  ;;  %v887_v30 = vadd.f32 %v886_v27, %v717_v22 }
 0x105   :  { %1454 = vst.msk [vmem:[%s2612_s4 + $0xa4] sm:$0xf] %vm1412_vm1, %v1389_v25  ;;  %756 = vmatmul.bf16.gmra.mxu0 %v1597_v18  ;;  %836 = vmatmul.bf16.gmra.mxu2 %v1725_v19 }
 0x106   :  { %1423 = vst.msk [vmem:[%s2612_s4 + $0x28] sm:$0xf] %vm1412_vm1, %v1358_v28  ;;  %v1190_v31 = vld [vmem:[#allocation2 + $0x150] sm:$0xff]  ;;  %v1028_v32 = vadd.f32 %v887_v30, %v114_v26  ;;  %925 = vmatmul.bf16.gmra.mxu1 %v1601_v23  ;;  %1005 = vmatmul.bf16.gmra.mxu3 %v1729_v24  ;;  %v117_v30 = vld [vmem:[#allocation2 + $0x78] sm:$0xff] }
 0x107   :  { %v1258_v33 = vmul.f32 %v2094_v5, %v1190_v31  ;;  %v1159_v34 = vld [vmem:[#allocation2 + $0x58] sm:$0xff]  ;;  %1124 = vst.msk [vmem:[#allocation2 + $0x158] sm:$0xff] %vm37_vm0, %v1059_v29  ;;  %v148_v24 = vld [vmem:[#allocation2 + $0x170] sm:$0xff] }
 0x108   :  { %v1227_v35 = vmul.f32 %v2094_v5, %v1159_v34  ;;  %1093 = vst.msk [vmem:[#allocation2 + $0x60] sm:$0xff] %vm37_vm0, %v1028_v32  ;;  %v797_v37 = vpop.f32.mrf.mxu2 }
 0x109   :  { %v1326_v38 = vadd.f32 %v2101_v7, %v1258_v33  ;;  %v966_v40 = vpop.f32.mrf.mxu3 }
 0x10a   :  { %v1295_v41 = vadd.f32 %v2101_v7, %v1227_v35  ;;  %v967_v42 = vadd.f32 %v966_v40, %v797_v37  ;;  %v719_v43 = vpop.f32.mrf.mxu0 }
 0x10b   :  { %v1390_v44 = vpack.c.bf16 %v1326_v38, %v1326_v38  ;;  %v888_v46 = vpop.f32.mrf.mxu1 }
 0x10c   :  { %v1359_v47 = vpack.c.bf16 %v1295_v41, %v1295_v41  ;;  %v1060_v48 = vadd.f32 %v967_v42, %v146_v39  ;;  %v889_v49 = vadd.f32 %v888_v46, %v719_v43  ;;  %v149_v43 = vld [vmem:[#allocation2 + $0x178] sm:$0xff] }
 0x10d   :  { %1455 = vst.msk [vmem:[%s2612_s4 + $0xa8] sm:$0xf] %vm1412_vm1, %v1390_v44 }
 0x10e   :  { %1424 = vst.msk [vmem:[%s2612_s4 + $0x2c] sm:$0xf] %vm1412_vm1, %v1359_v47  ;;  %v1191_v55 = vld [vmem:[#allocation2 + $0x158] sm:$0xff]  ;;  %v1029_v56 = vadd.f32 %v889_v49, %v115_v45  ;;  %v118_v49 = vld [vmem:[#allocation2 + $0x80] sm:$0xff] }
 0x10f   :  { %v1259_v58 = vmul.f32 %v2094_v5, %v1191_v55  ;;  %v1160_v59 = vld [vmem:[#allocation2 + $0x60] sm:$0xff]  ;;  %1125 = vst.msk [vmem:[#allocation2 + $0x160] sm:$0xff] %vm37_vm0, %v1060_v48 }
 0x110   :  { %v1228_v62 = vmul.f32 %v2094_v5, %v1160_v59  ;;  %1094 = vst.msk [vmem:[#allocation2 + $0x68] sm:$0xff] %vm37_vm0, %v1029_v56  ;;  %v799_v63 = vpop.f32.mrf.mxu2 }
 0x111   :  { %v1327_v0 = vadd.f32 %v2101_v7, %v1259_v58  ;;  %v968_v2 = vpop.f32.mrf.mxu3 }
 0x112   :  { %v1296_v6 = vadd.f32 %v2101_v7, %v1228_v62  ;;  %v969_v8 = vadd.f32 %v968_v2, %v799_v63  ;;  %v722_v9 = vpop.f32.mrf.mxu0 }
 0x113   :  { %v1391_v11 = vpack.c.bf16 %v1327_v0, %v1327_v0  ;;  %v891_v13 = vpop.f32.mrf.mxu1 }
 0x114   :  { %v1360_v14 = vpack.c.bf16 %v1296_v6, %v1296_v6  ;;  %v1061_v15 = vadd.f32 %v969_v8, %v147_v1  ;;  %v892_v16 = vadd.f32 %v891_v13, %v722_v9 }
 0x115   :  { %1456 = vst.msk [vmem:[%s2612_s4 + $0xac] sm:$0xf] %vm1412_vm1, %v1391_v11  ;;  %761 = vmatmul.bf16.gmra.mxu0 %v1605_v3  ;;  %841 = vmatmul.bf16.gmra.mxu2 %v1733_v4  ;;  %v119_v3 = vld [vmem:[#allocation2 + $0x88] sm:$0xff] }
 0x116   :  { %1425 = vst.msk [vmem:[%s2612_s4 + $0x30] sm:$0xf] %vm1412_vm1, %v1360_v14  ;;  %v1192_v17 = vld [vmem:[#allocation2 + $0x160] sm:$0xff]  ;;  %v1030_v18 = vadd.f32 %v892_v16, %v116_v12  ;;  %930 = vmatmul.bf16.gmra.mxu1 %v1609_v36  ;;  %1010 = vmatmul.bf16.gmra.mxu3 %v1737_v10  ;;  %v151_v16 = vld [vmem:[#allocation2 + $0x188] sm:$0xff] }
 0x117   :  { %v1260_v19 = vmul.f32 %v2094_v5, %v1192_v17  ;;  %v1161_v20 = vld [vmem:[#allocation2 + $0x68] sm:$0xff]  ;;  %1126 = vst.msk [vmem:[#allocation2 + $0x168] sm:$0xff] %vm37_vm0, %v1061_v15 }
 0x118   :  { %v1229_v21 = vmul.f32 %v2094_v5, %v1161_v20  ;;  %1095 = vst.msk [vmem:[#allocation2 + $0x70] sm:$0xff] %vm37_vm0, %v1030_v18  ;;  %v802_v22 = vpop.f32.mrf.mxu2 }
 0x119   :  { %v1328_v23 = vadd.f32 %v2101_v7, %v1260_v19  ;;  %v971_v25 = vpop.f32.mrf.mxu3 }
 0x11a   :  { %v1297_v26 = vadd.f32 %v2101_v7, %v1229_v21  ;;  %v972_v27 = vadd.f32 %v971_v25, %v802_v22  ;;  %v724_v28 = vpop.f32.mrf.mxu0  ;;  %v120_v22 = vld [vmem:[#allocation2 + $0x90] sm:$0xff] }
 0x11b   :  { %v1392_v29 = vpack.c.bf16 %v1328_v23, %v1328_v23  ;;  %v893_v31 = vpop.f32.mrf.mxu1 }
 0x11c   :  { %v1361_v32 = vpack.c.bf16 %v1297_v26, %v1297_v26  ;;  %v1062_v33 = vadd.f32 %v972_v27, %v148_v24  ;;  %v894_v34 = vadd.f32 %v893_v31, %v724_v28  ;;  %v2386_v27 = vld [vmem:[%s2610_s2] ss:$0 sm:$0xff] }
 0x11d   :  { %1457 = vst.msk [vmem:[%s2612_s4 + $0xb0] sm:$0xf] %vm1412_vm1, %v1392_v29 }
 0x11e   :  { %1426 = vst.msk [vmem:[%s2612_s4 + $0x34] sm:$0xf] %vm1412_vm1, %v1361_v32  ;;  %v1193_v35 = vld [vmem:[#allocation2 + $0x168] sm:$0xff]  ;;  %v1031_v37 = vadd.f32 %v894_v34, %v117_v30  ;;  %v2395_v32 = vld [vmem:[%s2611_s3] ss:$0 sm:$0xff]  ;;  %v152_v34 = vld [vmem:[#allocation2 + $0x190] sm:$0xff] }
 0x11f   :  { %v1261_v38 = vmul.f32 %v2094_v5, %v1193_v35  ;;  %v1162_v39 = vld [vmem:[#allocation2 + $0x70] sm:$0xff]  ;;  %1127 = vst.msk [vmem:[#allocation2 + $0x170] sm:$0xff] %vm37_vm0, %v1062_v33 }
 0x120   :  { %v1230_v40 = vmul.f32 %v2094_v5, %v1162_v39  ;;  %1096 = vst.msk [vmem:[#allocation2 + $0x78] sm:$0xff] %vm37_vm0, %v1031_v37  ;;  %v804_v41 = vpop.f32.mrf.mxu2 }
 0x121   :  { %v1329_v42 = vadd.f32 %v2101_v7, %v1261_v38  ;;  %v973_v44 = vpop.f32.mrf.mxu3 }
 0x122   :  { %v1298_v45 = vadd.f32 %v2101_v7, %v1230_v40  ;;  %v974_v46 = vadd.f32 %v973_v44, %v804_v41  ;;  %v727_v47 = vpop.f32.mrf.mxu0  ;;  %v121_v41 = vld [vmem:[#allocation2 + $0x98] sm:$0xff] }
 0x123   :  { %v1393_v48 = vpack.c.bf16 %v1329_v42, %v1329_v42  ;;  %v896_v50 = vpop.f32.mrf.mxu1 }
 0x124   :  { %v1362_v51 = vpack.c.bf16 %v1298_v45, %v1298_v45  ;;  %v1063_v52 = vadd.f32 %v974_v46, %v149_v43  ;;  %v897_v53 = vadd.f32 %v896_v50, %v727_v47 }
 0x125   :  { %1458 = vst.msk [vmem:[%s2612_s4 + $0xb4] sm:$0xf] %vm1412_vm1, %v1393_v48 }
 0x126   :  { %1427 = vst.msk [vmem:[%s2612_s4 + $0x38] sm:$0xf] %vm1412_vm1, %v1362_v51  ;;  %v1194_v54 = vld [vmem:[#allocation2 + $0x170] sm:$0xff]  ;;  %v1032_v55 = vadd.f32 %v897_v53, %v118_v49  ;;  %v153_v53 = vld [vmem:[#allocation2 + $0x198] sm:$0xff] }
 0x127   :  { %v1262_v56 = vmul.f32 %v2094_v5, %v1194_v54  ;;  %v1163_v57 = vld [vmem:[#allocation2 + $0x78] sm:$0xff]  ;;  %1128 = vst.msk [vmem:[#allocation2 + $0x178] sm:$0xff] %vm37_vm0, %v1063_v52 }
 0x128   :  { %v1231_v58 = vmul.f32 %v2094_v5, %v1163_v57  ;;  %1097 = vst.msk [vmem:[#allocation2 + $0x80] sm:$0xff] %vm37_vm0, %v1032_v55  ;;  %v807_v59 = vpop.f32.mrf.mxu2 }
 0x129   :  { %v1330_v60 = vadd.f32 %v2101_v7, %v1262_v56  ;;  %v976_v62 = vpop.f32.mrf.mxu3 }
 0x12a   :  { %v1299_v63 = vadd.f32 %v2101_v7, %v1231_v58  ;;  %v977_v0 = vadd.f32 %v976_v62, %v807_v59  ;;  %v729_v1 = vpop.f32.mrf.mxu0  ;;  %v122_v59 = vld [vmem:[#allocation2 + $0xa0] sm:$0xff] }
 0x12b   :  { %v1394_v2 = vpack.c.bf16 %v1330_v60, %v1330_v60  ;;  %v898_v4 = vpop.f32.mrf.mxu1 }
 0x12c   :  { %v1363_v6 = vpack.c.bf16 %v1299_v63, %v1299_v63  ;;  %v1064_v8 = vadd.f32 %v977_v0, %v150_v61  ;;  %v899_v9 = vadd.f32 %v898_v4, %v729_v1 }
 0x12d   :  { %1459 = vst.msk [vmem:[%s2612_s4 + $0xb8] sm:$0xf] %vm1412_vm1, %v1394_v2 }
 0x12e   :  { %1428 = vst.msk [vmem:[%s2612_s4 + $0x3c] sm:$0xf] %vm1412_vm1, %v1363_v6  ;;  %v1195_v36 = vld [vmem:[#allocation2 + $0x178] sm:$0xff]  ;;  %v1033_v10 = vadd.f32 %v899_v9, %v119_v3  ;;  %v154_v9 = vld [vmem:[#allocation2 + $0x1a0] sm:$0xff] }
 0x12f   :  { %v1263_v11 = vmul.f32 %v2094_v5, %v1195_v36  ;;  %v1164_v12 = vld [vmem:[#allocation2 + $0x80] sm:$0xff]  ;;  %1129 = vst.msk [vmem:[#allocation2 + $0x180] sm:$0xff] %vm37_vm0, %v1064_v8 }
 0x130   :  { %v1232_v13 = vmul.f32 %v2094_v5, %v1164_v12  ;;  %1098 = vst.msk [vmem:[#allocation2 + $0x88] sm:$0xff] %vm37_vm0, %v1033_v10  ;;  %v809_v14 = vpop.f32.mrf.mxu2 }
 0x131   :  { %v1331_v15 = vadd.f32 %v2101_v7, %v1263_v11  ;;  %v978_v17 = vpop.f32.mrf.mxu3 }
 0x132   :  { %v1300_v18 = vadd.f32 %v2101_v7, %v1232_v13  ;;  %v979_v19 = vadd.f32 %v978_v17, %v809_v14  ;;  %v732_v20 = vpop.f32.mrf.mxu0  ;;  %v123_v14 = vld [vmem:[#allocation2 + $0xa8] sm:$0xff] }
 0x133   :  { %v1395_v21 = vpack.c.bf16 %v1331_v15, %v1331_v15  ;;  %v901_v23 = vpop.f32.mrf.mxu1 }
 0x134   :  { %v1364_v24 = vpack.c.bf16 %v1300_v18, %v1300_v18  ;;  %v1065_v25 = vadd.f32 %v979_v19, %v151_v16  ;;  %v902_v26 = vadd.f32 %v901_v23, %v732_v20 }
 0x135   :  { %1460 = vst.msk [vmem:[%s2612_s4 + $0xbc] sm:$0xf] %vm1412_vm1, %v1395_v21 }
 0x136   :  { %1429 = vst.msk [vmem:[%s2612_s4 + $0x40] sm:$0xf] %vm1412_vm1, %v1364_v24  ;;  %v1196_v5 = vld [vmem:[#allocation2 + $0x180] sm:$0xff]  ;;  %v1034_v7 = vadd.f32 %v902_v26, %v120_v22  ;;  %v155_v26 = vld [vmem:[#allocation2 + $0x1a8] sm:$0xff] }
 0x137   :  { %v1264_v28 = vmul.f32 %v2386_v27, %v1196_v5  ;;  %v1165_v29 = vld [vmem:[#allocation2 + $0x88] sm:$0xff]  ;;  %1130 = vst.msk [vmem:[#allocation2 + $0x188] sm:$0xff] %vm37_vm0, %v1065_v25 }
 0x138   :  { %v1233_v30 = vmul.f32 %v2386_v27, %v1165_v29  ;;  %1099 = vst.msk [vmem:[#allocation2 + $0x90] sm:$0xff] %vm37_vm0, %v1034_v7  ;;  %v812_v31 = vpop.f32.mrf.mxu2 }
 0x139   :  { %v1332_v33 = vadd.f32 %v2395_v32, %v1264_v28  ;;  %v981_v35 = vpop.f32.mrf.mxu3 }
 0x13a   :  { %v1301_v37 = vadd.f32 %v2395_v32, %v1233_v30  ;;  %v982_v38 = vadd.f32 %v981_v35, %v812_v31  ;;  %v734_v39 = vpop.f32.mrf.mxu0  ;;  %v124_v31 = vld [vmem:[#allocation2 + $0xb0] sm:$0xff] }
 0x13b   :  { %v1396_v40 = vpack.c.bf16 %v1332_v33, %v1332_v33  ;;  %v903_v42 = vpop.f32.mrf.mxu1 }
 0x13c   :  { %v1365_v43 = vpack.c.bf16 %v1301_v37, %v1301_v37  ;;  %v1066_v44 = vadd.f32 %v982_v38, %v152_v34  ;;  %v904_v45 = vadd.f32 %v903_v42, %v734_v39 }
 0x13d   :  { %1461 = vst.msk [vmem:[%s2612_s4 + $0xc0] sm:$0xf] %vm1412_vm1, %v1396_v40 }
 0x13e   :  { %1430 = vst.msk [vmem:[%s2612_s4 + $0x44] sm:$0xf] %vm1412_vm1, %v1365_v43  ;;  %v1197_v46 = vld [vmem:[#allocation2 + $0x188] sm:$0xff]  ;;  %v1035_v47 = vadd.f32 %v904_v45, %v121_v41  ;;  %v156_v45 = vld [vmem:[#allocation2 + $0x1b0] sm:$0xff] }
 0x13f   :  { %v1265_v48 = vmul.f32 %v2386_v27, %v1197_v46  ;;  %v1166_v49 = vld [vmem:[#allocation2 + $0x90] sm:$0xff]  ;;  %1131 = vst.msk [vmem:[#allocation2 + $0x190] sm:$0xff] %vm37_vm0, %v1066_v44 }
 0x140   :  { %v1234_v50 = vmul.f32 %v2386_v27, %v1166_v49  ;;  %1100 = vst.msk [vmem:[#allocation2 + $0x98] sm:$0xff] %vm37_vm0, %v1035_v47  ;;  %v814_v51 = vpop.f32.mrf.mxu2 }
 0x141   :  { %v1333_v52 = vadd.f32 %v2395_v32, %v1265_v48  ;;  %v983_v54 = vpop.f32.mrf.mxu3 }
 0x142   :  { %v1302_v55 = vadd.f32 %v2395_v32, %v1234_v50  ;;  %v984_v56 = vadd.f32 %v983_v54, %v814_v51  ;;  %v737_v57 = vpop.f32.mrf.mxu0  ;;  %v125_v51 = vld [vmem:[#allocation2 + $0xb8] sm:$0xff] }
 0x143   :  { %v1397_v58 = vpack.c.bf16 %v1333_v52, %v1333_v52  ;;  %v906_v60 = vpop.f32.mrf.mxu1 }
 0x144   :  { %v1366_v61 = vpack.c.bf16 %v1302_v55, %v1302_v55  ;;  %v1067_v62 = vadd.f32 %v984_v56, %v153_v53  ;;  %v907_v63 = vadd.f32 %v906_v60, %v737_v57 }
 0x145   :  { %1462 = vst.msk [vmem:[%s2612_s4 + $0xc4] sm:$0xf] %vm1412_vm1, %v1397_v58 }
 0x146   :  { %1431 = vst.msk [vmem:[%s2612_s4 + $0x48] sm:$0xf] %vm1412_vm1, %v1366_v61  ;;  %v1198_v0 = vld [vmem:[#allocation2 + $0x190] sm:$0xff]  ;;  %v1036_v1 = vadd.f32 %v907_v63, %v122_v59  ;;  %v157_v63 = vld [vmem:[#allocation2 + $0x1b8] sm:$0xff] }
 0x147   :  { %v1266_v2 = vmul.f32 %v2386_v27, %v1198_v0  ;;  %v1167_v3 = vld [vmem:[#allocation2 + $0x98] sm:$0xff]  ;;  %1132 = vst.msk [vmem:[#allocation2 + $0x198] sm:$0xff] %vm37_vm0, %v1067_v62 }
 0x148   :  { %v1235_v4 = vmul.f32 %v2386_v27, %v1167_v3  ;;  %1101 = vst.msk [vmem:[#allocation2 + $0xa0] sm:$0xff] %vm37_vm0, %v1036_v1  ;;  %v817_v6 = vpop.f32.mrf.mxu2 }
 0x149   :  { %v1334_v8 = vadd.f32 %v2395_v32, %v1266_v2  ;;  %v986_v36 = vpop.f32.mrf.mxu3 }
 0x14a   :  { %v1303_v10 = vadd.f32 %v2395_v32, %v1235_v4  ;;  %v987_v11 = vadd.f32 %v986_v36, %v817_v6  ;;  %v739_v12 = vpop.f32.mrf.mxu0  ;;  %v126_v6 = vld [vmem:[#allocation2 + $0xc0] sm:$0xff] }
 0x14b   :  { %v1398_v13 = vpack.c.bf16 %v1334_v8, %v1334_v8  ;;  %v908_v15 = vpop.f32.mrf.mxu1 }
 0x14c   :  { %v1367_v16 = vpack.c.bf16 %v1303_v10, %v1303_v10  ;;  %v1068_v17 = vadd.f32 %v987_v11, %v154_v9  ;;  %v909_v18 = vadd.f32 %v908_v15, %v739_v12 }
 0x14d   :  { %1463 = vst.msk [vmem:[%s2612_s4 + $0xc8] sm:$0xf] %vm1412_vm1, %v1398_v13 }
 0x14e   :  { %1432 = vst.msk [vmem:[%s2612_s4 + $0x4c] sm:$0xf] %vm1412_vm1, %v1367_v16  ;;  %v1199_v19 = vld [vmem:[#allocation2 + $0x198] sm:$0xff]  ;;  %v1037_v20 = vadd.f32 %v909_v18, %v123_v14  ;;  %v158_v18 = vld [vmem:[#allocation2 + $0x1c0] sm:$0xff] }
 0x14f   :  { %v1267_v21 = vmul.f32 %v2386_v27, %v1199_v19  ;;  %v1168_v22 = vld [vmem:[#allocation2 + $0xa0] sm:$0xff]  ;;  %1133 = vst.msk [vmem:[#allocation2 + $0x1a0] sm:$0xff] %vm37_vm0, %v1068_v17 }
 0x150   :  { %v1236_v23 = vmul.f32 %v2386_v27, %v1168_v22  ;;  %1102 = vst.msk [vmem:[#allocation2 + $0xa8] sm:$0xff] %vm37_vm0, %v1037_v20  ;;  %v819_v24 = vpop.f32.mrf.mxu2 }
 0x151   :  { %v1335_v25 = vadd.f32 %v2395_v32, %v1267_v21  ;;  %v988_v5 = vpop.f32.mrf.mxu3 }
 0x152   :  { %v1304_v7 = vadd.f32 %v2395_v32, %v1236_v23  ;;  %v989_v28 = vadd.f32 %v988_v5, %v819_v24  ;;  %v742_v29 = vpop.f32.mrf.mxu0  ;;  %v127_v24 = vld [vmem:[#allocation2 + $0xc8] sm:$0xff] }
 0x153   :  { %v1399_v30 = vpack.c.bf16 %v1335_v25, %v1335_v25  ;;  %v911_v33 = vpop.f32.mrf.mxu1 }
 0x154   :  { %v1368_v34 = vpack.c.bf16 %v1304_v7, %v1304_v7  ;;  %v1069_v35 = vadd.f32 %v989_v28, %v155_v26  ;;  %v912_v37 = vadd.f32 %v911_v33, %v742_v29 }
 0x155   :  { %1464 = vst.msk [vmem:[%s2612_s4 + $0xcc] sm:$0xf] %vm1412_vm1, %v1399_v30 }
 0x156   :  { %1433 = vst.msk [vmem:[%s2612_s4 + $0x50] sm:$0xf] %vm1412_vm1, %v1368_v34  ;;  %v1200_v38 = vld [vmem:[#allocation2 + $0x1a0] sm:$0xff]  ;;  %v1038_v39 = vadd.f32 %v912_v37, %v124_v31  ;;  %v159_v37 = vld [vmem:[#allocation2 + $0x1c8] sm:$0xff] }
 0x157   :  { %v1268_v40 = vmul.f32 %v2386_v27, %v1200_v38  ;;  %v1169_v41 = vld [vmem:[#allocation2 + $0xa8] sm:$0xff]  ;;  %1134 = vst.msk [vmem:[#allocation2 + $0x1a8] sm:$0xff] %vm37_vm0, %v1069_v35 }
 0x158   :  { %v1237_v42 = vmul.f32 %v2386_v27, %v1169_v41  ;;  %1103 = vst.msk [vmem:[#allocation2 + $0xb0] sm:$0xff] %vm37_vm0, %v1038_v39  ;;  %v822_v43 = vpop.f32.mrf.mxu2 }
 0x159   :  { %v1336_v44 = vadd.f32 %v2395_v32, %v1268_v40  ;;  %v991_v46 = vpop.f32.mrf.mxu3 }
 0x15a   :  { %v1305_v47 = vadd.f32 %v2395_v32, %v1237_v42  ;;  %v992_v48 = vadd.f32 %v991_v46, %v822_v43  ;;  %v744_v49 = vpop.f32.mrf.mxu0  ;;  %v128_v43 = vld [vmem:[#allocation2 + $0xd0] sm:$0xff] }
 0x15b   :  { %v1400_v50 = vpack.c.bf16 %v1336_v44, %v1336_v44  ;;  %v913_v52 = vpop.f32.mrf.mxu1 }
 0x15c   :  { %v1369_v53 = vpack.c.bf16 %v1305_v47, %v1305_v47  ;;  %v1070_v54 = vadd.f32 %v992_v48, %v156_v45  ;;  %v914_v55 = vadd.f32 %v913_v52, %v744_v49 }
 0x15d   :  { %1465 = vst.msk [vmem:[%s2612_s4 + $0xd0] sm:$0xf] %vm1412_vm1, %v1400_v50 }
 0x15e   :  { %1434 = vst.msk [vmem:[%s2612_s4 + $0x54] sm:$0xf] %vm1412_vm1, %v1369_v53  ;;  %v1201_v56 = vld [vmem:[#allocation2 + $0x1a8] sm:$0xff]  ;;  %v1039_v57 = vadd.f32 %v914_v55, %v125_v51  ;;  %v160_v55 = vld [vmem:[#allocation2 + $0x1d0] sm:$0xff] }
 0x15f   :  { %v1269_v58 = vmul.f32 %v2386_v27, %v1201_v56  ;;  %v1170_v59 = vld [vmem:[#allocation2 + $0xb0] sm:$0xff]  ;;  %1135 = vst.msk [vmem:[#allocation2 + $0x1b0] sm:$0xff] %vm37_vm0, %v1070_v54 }
 0x160   :  { %v1238_v60 = vmul.f32 %v2386_v27, %v1170_v59  ;;  %1104 = vst.msk [vmem:[#allocation2 + $0xb8] sm:$0xff] %vm37_vm0, %v1039_v57  ;;  %v824_v61 = vpop.f32.mrf.mxu2 }
 0x161   :  { %v1337_v62 = vadd.f32 %v2395_v32, %v1269_v58  ;;  %v993_v0 = vpop.f32.mrf.mxu3 }
 0x162   :  { %v1306_v1 = vadd.f32 %v2395_v32, %v1238_v60  ;;  %v994_v2 = vadd.f32 %v993_v0, %v824_v61  ;;  %v747_v3 = vpop.f32.mrf.mxu0  ;;  %v129_v61 = vld [vmem:[#allocation2 + $0xd8] sm:$0xff] }
 0x163   :  { %v1401_v4 = vpack.c.bf16 %v1337_v62, %v1337_v62  ;;  %v916_v8 = vpop.f32.mrf.mxu1 }
 0x164   :  { %v1370_v9 = vpack.c.bf16 %v1306_v1, %v1306_v1  ;;  %v1071_v36 = vadd.f32 %v994_v2, %v157_v63  ;;  %v917_v10 = vadd.f32 %v916_v8, %v747_v3 }
 0x165   :  { %1466 = vst.msk [vmem:[%s2612_s4 + $0xd4] sm:$0xf] %vm1412_vm1, %v1401_v4 }
 0x166   :  { %1435 = vst.msk [vmem:[%s2612_s4 + $0x58] sm:$0xf] %vm1412_vm1, %v1370_v9  ;;  %v1202_v11 = vld [vmem:[#allocation2 + $0x1b0] sm:$0xff]  ;;  %v1040_v12 = vadd.f32 %v917_v10, %v126_v6  ;;  %v161_v10 = vld [vmem:[#allocation2 + $0x1d8] sm:$0xff] }
 0x167   :  { %v1270_v13 = vmul.f32 %v2386_v27, %v1202_v11  ;;  %v1171_v14 = vld [vmem:[#allocation2 + $0xb8] sm:$0xff]  ;;  %1136 = vst.msk [vmem:[#allocation2 + $0x1b8] sm:$0xff] %vm37_vm0, %v1071_v36 }
 0x168   :  { %v1239_v15 = vmul.f32 %v2386_v27, %v1171_v14  ;;  %1105 = vst.msk [vmem:[#allocation2 + $0xc0] sm:$0xff] %vm37_vm0, %v1040_v12  ;;  %v827_v16 = vpop.f32.mrf.mxu2 }
 0x169   :  { %v1338_v17 = vadd.f32 %v2395_v32, %v1270_v13  ;;  %v996_v19 = vpop.f32.mrf.mxu3 }
 0x16a   :  { %v1307_v20 = vadd.f32 %v2395_v32, %v1239_v15  ;;  %v997_v21 = vadd.f32 %v996_v19, %v827_v16  ;;  %v749_v22 = vpop.f32.mrf.mxu0  ;;  %v130_v16 = vld [vmem:[#allocation2 + $0xe0] sm:$0xff] }
 0x16b   :  { %v1402_v23 = vpack.c.bf16 %v1338_v17, %v1338_v17  ;;  %v918_v25 = vpop.f32.mrf.mxu1 }
 0x16c   :  { %v1371_v26 = vpack.c.bf16 %v1307_v20, %v1307_v20  ;;  %v1072_v5 = vadd.f32 %v997_v21, %v158_v18  ;;  %v919_v7 = vadd.f32 %v918_v25, %v749_v22 }
 0x16d   :  { %1467 = vst.msk [vmem:[%s2612_s4 + $0xd8] sm:$0xf] %vm1412_vm1, %v1402_v23 }
 0x16e   :  { %1436 = vst.msk [vmem:[%s2612_s4 + $0x5c] sm:$0xf] %vm1412_vm1, %v1371_v26  ;;  %v1203_v28 = vld [vmem:[#allocation2 + $0x1b8] sm:$0xff]  ;;  %v1041_v29 = vadd.f32 %v919_v7, %v127_v24  ;;  %v162_v7 = vld [vmem:[#allocation2 + $0x1e0] sm:$0xff] }
 0x16f   :  { %v1271_v30 = vmul.f32 %v2386_v27, %v1203_v28  ;;  %v1172_v31 = vld [vmem:[#allocation2 + $0xc0] sm:$0xff]  ;;  %1137 = vst.msk [vmem:[#allocation2 + $0x1c0] sm:$0xff] %vm37_vm0, %v1072_v5 }
 0x170   :  { %v1240_v33 = vmul.f32 %v2386_v27, %v1172_v31  ;;  %1106 = vst.msk [vmem:[#allocation2 + $0xc8] sm:$0xff] %vm37_vm0, %v1041_v29  ;;  %v829_v34 = vpop.f32.mrf.mxu2 }
 0x171   :  { %v1339_v35 = vadd.f32 %v2395_v32, %v1271_v30  ;;  %v998_v38 = vpop.f32.mrf.mxu3 }
 0x172   :  { %v1308_v39 = vadd.f32 %v2395_v32, %v1240_v33  ;;  %v999_v40 = vadd.f32 %v998_v38, %v829_v34  ;;  %v752_v41 = vpop.f32.mrf.mxu0  ;;  %v131_v34 = vld [vmem:[#allocation2 + $0xe8] sm:$0xff] }
 0x173   :  { %v1403_v42 = vpack.c.bf16 %v1339_v35, %v1339_v35  ;;  %v921_v44 = vpop.f32.mrf.mxu1 }
 0x174   :  { %v1372_v45 = vpack.c.bf16 %v1308_v39, %v1308_v39  ;;  %v1073_v46 = vadd.f32 %v999_v40, %v159_v37  ;;  %v922_v47 = vadd.f32 %v921_v44, %v752_v41 }
 0x175   :  { %1468 = vst.msk [vmem:[%s2612_s4 + $0xdc] sm:$0xf] %vm1412_vm1, %v1403_v42 }
 0x176   :  { %1437 = vst.msk [vmem:[%s2612_s4 + $0x60] sm:$0xf] %vm1412_vm1, %v1372_v45  ;;  %v1204_v48 = vld [vmem:[#allocation2 + $0x1c0] sm:$0xff]  ;;  %v1042_v49 = vadd.f32 %v922_v47, %v128_v43  ;;  %v163_v47 = vld [vmem:[#allocation2 + $0x1e8] sm:$0xff] }
 0x177   :  { %v1272_v50 = vmul.f32 %v2386_v27, %v1204_v48  ;;  %v1173_v51 = vld [vmem:[#allocation2 + $0xc8] sm:$0xff]  ;;  %1138 = vst.msk [vmem:[#allocation2 + $0x1c8] sm:$0xff] %vm37_vm0, %v1073_v46 }
 0x178   :  { %v1241_v52 = vmul.f32 %v2386_v27, %v1173_v51  ;;  %1107 = vst.msk [vmem:[#allocation2 + $0xd0] sm:$0xff] %vm37_vm0, %v1042_v49  ;;  %v832_v53 = vpop.f32.mrf.mxu2 }
 0x179   :  { %v1340_v54 = vadd.f32 %v2395_v32, %v1272_v50  ;;  %v1001_v56 = vpop.f32.mrf.mxu3 }
 0x17a   :  { %v1309_v57 = vadd.f32 %v2395_v32, %v1241_v52  ;;  %v1002_v58 = vadd.f32 %v1001_v56, %v832_v53  ;;  %v754_v59 = vpop.f32.mrf.mxu0  ;;  %v132_v53 = vld [vmem:[#allocation2 + $0xf0] sm:$0xff] }
 0x17b   :  { %v1404_v60 = vpack.c.bf16 %v1340_v54, %v1340_v54  ;;  %v923_v62 = vpop.f32.mrf.mxu1 }
 0x17c   :  { %v1373_v63 = vpack.c.bf16 %v1309_v57, %v1309_v57  ;;  %v1074_v0 = vadd.f32 %v1002_v58, %v160_v55  ;;  %v924_v1 = vadd.f32 %v923_v62, %v754_v59 }
 0x17d   :  { %1469 = vst.msk [vmem:[%s2612_s4 + $0xe0] sm:$0xf] %vm1412_vm1, %v1404_v60 }
 0x17e   :  { %1438 = vst.msk [vmem:[%s2612_s4 + $0x64] sm:$0xf] %vm1412_vm1, %v1373_v63  ;;  %v1205_v2 = vld [vmem:[#allocation2 + $0x1c8] sm:$0xff]  ;;  %v1043_v3 = vadd.f32 %v924_v1, %v129_v61  ;;  %v164_v1 = vld [vmem:[#allocation2 + $0x1f0] sm:$0xff] }
 0x17f   :  { %v1273_v4 = vmul.f32 %v2386_v27, %v1205_v2  ;;  %v1174_v6 = vld [vmem:[#allocation2 + $0xd0] sm:$0xff]  ;;  %1139 = vst.msk [vmem:[#allocation2 + $0x1d0] sm:$0xff] %vm37_vm0, %v1074_v0 }
 0x180   :  { %v1242_v8 = vmul.f32 %v2386_v27, %v1174_v6  ;;  %1108 = vst.msk [vmem:[#allocation2 + $0xd8] sm:$0xff] %vm37_vm0, %v1043_v3  ;;  %v834_v9 = vpop.f32.mrf.mxu2 }
 0x181   :  { %v1341_v36 = vadd.f32 %v2395_v32, %v1273_v4  ;;  %v1003_v11 = vpop.f32.mrf.mxu3 }
 0x182   :  { %v1310_v12 = vadd.f32 %v2395_v32, %v1242_v8  ;;  %v1004_v13 = vadd.f32 %v1003_v11, %v834_v9  ;;  %v757_v14 = vpop.f32.mrf.mxu0  ;;  %v133_v9 = vld [vmem:[#allocation2 + $0xf8] sm:$0xff] }
 0x183   :  { %v1405_v15 = vpack.c.bf16 %v1341_v36, %v1341_v36  ;;  %v926_v17 = vpop.f32.mrf.mxu1 }
 0x184   :  { %v1374_v18 = vpack.c.bf16 %v1310_v12, %v1310_v12  ;;  %v1075_v19 = vadd.f32 %v1004_v13, %v161_v10  ;;  %v927_v20 = vadd.f32 %v926_v17, %v757_v14 }
 0x185   :  { %1470 = vst.msk [vmem:[%s2612_s4 + $0xe4] sm:$0xf] %vm1412_vm1, %v1405_v15 }
 0x186   :  { %1439 = vst.msk [vmem:[%s2612_s4 + $0x68] sm:$0xf] %vm1412_vm1, %v1374_v18  ;;  %v1206_v21 = vld [vmem:[#allocation2 + $0x1d0] sm:$0xff]  ;;  %v1044_v22 = vadd.f32 %v927_v20, %v130_v16  ;;  %v165_v20 = vld [vmem:[#allocation2 + $0x1f8] sm:$0xff] }
 0x187   :  { %v1274_v23 = vmul.f32 %v2386_v27, %v1206_v21  ;;  %v1175_v24 = vld [vmem:[#allocation2 + $0xd8] sm:$0xff]  ;;  %1140 = vst.msk [vmem:[#allocation2 + $0x1d8] sm:$0xff] %vm37_vm0, %v1075_v19 }
 0x188   :  { %v1243_v25 = vmul.f32 %v2386_v27, %v1175_v24  ;;  %1109 = vst.msk [vmem:[#allocation2 + $0xe0] sm:$0xff] %vm37_vm0, %v1044_v22  ;;  %v837_v26 = vpop.f32.mrf.mxu2 }
 0x189   :  { %v1342_v5 = vadd.f32 %v2395_v32, %v1274_v23  ;;  %v1006_v28 = vpop.f32.mrf.mxu3 }
 0x18a   :  { %v1311_v29 = vadd.f32 %v2395_v32, %v1243_v25  ;;  %v1007_v30 = vadd.f32 %v1006_v28, %v837_v26  ;;  %v759_v31 = vpop.f32.mrf.mxu0 }
 0x18b   :  { %v1406_v33 = vpack.c.bf16 %v1342_v5, %v1342_v5  ;;  %v928_v35 = vpop.f32.mrf.mxu1 }
 0x18c   :  { %v1375_v37 = vpack.c.bf16 %v1311_v29, %v1311_v29  ;;  %v1076_v38 = vadd.f32 %v1007_v30, %v162_v7  ;;  %v929_v39 = vadd.f32 %v928_v35, %v759_v31 }
 0x18d   :  { %1471 = vst.msk [vmem:[%s2612_s4 + $0xe8] sm:$0xf] %vm1412_vm1, %v1406_v33 }
 0x18e   :  { %1440 = vst.msk [vmem:[%s2612_s4 + $0x6c] sm:$0xf] %vm1412_vm1, %v1375_v37  ;;  %v1207_v40 = vld [vmem:[#allocation2 + $0x1d8] sm:$0xff]  ;;  %v1045_v41 = vadd.f32 %v929_v39, %v131_v34 }
 0x18f   :  { %v1275_v42 = vmul.f32 %v2386_v27, %v1207_v40  ;;  %v1176_v43 = vld [vmem:[#allocation2 + $0xe0] sm:$0xff]  ;;  %1141 = vst.msk [vmem:[#allocation2 + $0x1e0] sm:$0xff] %vm37_vm0, %v1076_v38 }
 0x190   :  { %v1244_v44 = vmul.f32 %v2386_v27, %v1176_v43  ;;  %1110 = vst.msk [vmem:[#allocation2 + $0xe8] sm:$0xff] %vm37_vm0, %v1045_v41  ;;  %v839_v45 = vpop.f32.mrf.mxu2 }
 0x191   :  { %v1343_v46 = vadd.f32 %v2395_v32, %v1275_v42  ;;  %v1008_v48 = vpop.f32.mrf.mxu3 }
 0x192   :  { %v1312_v49 = vadd.f32 %v2395_v32, %v1244_v44  ;;  %v1009_v50 = vadd.f32 %v1008_v48, %v839_v45  ;;  %v762_v51 = vpop.f32.mrf.mxu0 }
 0x193   :  { %v1407_v52 = vpack.c.bf16 %v1343_v46, %v1343_v46  ;;  %v931_v54 = vpop.f32.mrf.mxu1 }
 0x194   :  { %v1376_v55 = vpack.c.bf16 %v1312_v49, %v1312_v49  ;;  %v1077_v56 = vadd.f32 %v1009_v50, %v163_v47  ;;  %v932_v57 = vadd.f32 %v931_v54, %v762_v51 }
 0x195   :  { %1472 = vst.msk [vmem:[%s2612_s4 + $0xec] sm:$0xf] %vm1412_vm1, %v1407_v52 }
 0x196   :  { %1441 = vst.msk [vmem:[%s2612_s4 + $0x70] sm:$0xf] %vm1412_vm1, %v1376_v55  ;;  %v1208_v58 = vld [vmem:[#allocation2 + $0x1e0] sm:$0xff]  ;;  %v1046_v59 = vadd.f32 %v932_v57, %v132_v53 }
 0x197   :  { %v1276_v60 = vmul.f32 %v2386_v27, %v1208_v58  ;;  %v1177_v61 = vld [vmem:[#allocation2 + $0xe8] sm:$0xff]  ;;  %1142 = vst.msk [vmem:[#allocation2 + $0x1e8] sm:$0xff] %vm37_vm0, %v1077_v56 }
 0x198   :  { %v1245_v62 = vmul.f32 %v2386_v27, %v1177_v61  ;;  %1111 = vst.msk [vmem:[#allocation2 + $0xf0] sm:$0xff] %vm37_vm0, %v1046_v59  ;;  %v842_v63 = vpop.f32.mrf.mxu2 }
 0x199   :  { %v1344_v0 = vadd.f32 %v2395_v32, %v1276_v60  ;;  %v1011_v2 = vpop.f32.mrf.mxu3 }
 0x19a   :  { %v1313_v3 = vadd.f32 %v2395_v32, %v1245_v62  ;;  %v1012_v4 = vadd.f32 %v1011_v2, %v842_v63  ;;  %v764_v6 = vpop.f32.mrf.mxu0 }
 0x19b   :  { %v1408_v8 = vpack.c.bf16 %v1344_v0, %v1344_v0  ;;  %v933_v36 = vpop.f32.mrf.mxu1 }
 0x19c   :  { %v1377_v10 = vpack.c.bf16 %v1313_v3, %v1313_v3  ;;  %v1078_v11 = vadd.f32 %v1012_v4, %v164_v1  ;;  %v934_v12 = vadd.f32 %v933_v36, %v764_v6 }
 0x19d   :  { %1473 = vst.msk [vmem:[%s2612_s4 + $0xf0] sm:$0xf] %vm1412_vm1, %v1408_v8 }
 0x19e   :  { %1442 = vst.msk [vmem:[%s2612_s4 + $0x74] sm:$0xf] %vm1412_vm1, %v1377_v10  ;;  %v1209_v13 = vld [vmem:[#allocation2 + $0x1e8] sm:$0xff]  ;;  %v1047_v14 = vadd.f32 %v934_v12, %v133_v9 }
 0x19f   :  { %v1277_v15 = vmul.f32 %v2386_v27, %v1209_v13  ;;  %v1178_v16 = vld [vmem:[#allocation2 + $0xf0] sm:$0xff]  ;;  %1143 = vst.msk [vmem:[#allocation2 + $0x1f0] sm:$0xff] %vm37_vm0, %v1078_v11 }
 0x1a0   :  { %v1246_v17 = vmul.f32 %v2386_v27, %v1178_v16  ;;  %1112 = vst.msk [vmem:[#allocation2 + $0xf8] sm:$0xff] %vm37_vm0, %v1047_v14  ;;  %v844_v18 = vpop.f32.mrf.mxu2 }
 0x1a1   :  { %v1345_v19 = vadd.f32 %v2395_v32, %v1277_v15  ;;  %v1013_v21 = vpop.f32.mrf.mxu3 }
 0x1a2   :  { %v1314_v22 = vadd.f32 %v2395_v32, %v1246_v17  ;;  %v1014_v23 = vadd.f32 %v1013_v21, %v844_v18 }
 0x1a3   :  { %v1409_v24 = vpack.c.bf16 %v1345_v19, %v1345_v19 }
 0x1a4   :  { %v1378_v25 = vpack.c.bf16 %v1314_v22, %v1314_v22  ;;  %v1079_v26 = vadd.f32 %v1014_v23, %v165_v20 }
 0x1a5   :  { %1474 = vst.msk [vmem:[%s2612_s4 + $0xf4] sm:$0xf] %vm1412_vm1, %v1409_v24 }
 0x1a6   :  { %1443 = vst.msk [vmem:[%s2612_s4 + $0x78] sm:$0xf] %vm1412_vm1, %v1378_v25  ;;  %v1210_v5 = vld [vmem:[#allocation2 + $0x1f0] sm:$0xff] }
 0x1a7   :  { %v1278_v7 = vmul.f32 %v2386_v27, %v1210_v5  ;;  %v1179_v28 = vld [vmem:[#allocation2 + $0xf8] sm:$0xff]  ;;  %1144 = vst.msk [vmem:[#allocation2 + $0x1f8] sm:$0xff] %vm37_vm0, %v1079_v26 }
 0x1a8   :  { %v1247_v29 = vmul.f32 %v2386_v27, %v1179_v28 }
 0x1a9   :  { %v1346_v30 = vadd.f32 %v2395_v32, %v1278_v7 }
 0x1aa   :  { %v1315_v31 = vadd.f32 %v2395_v32, %v1247_v29 }
 0x1ab   :  { %v1410_v33 = vpack.c.bf16 %v1346_v30, %v1346_v30 }
 0x1ac   :  { %v1379_v34 = vpack.c.bf16 %v1315_v31, %v1315_v31 }
 0x1ad   :  { %1475 = vst.msk [vmem:[%s2612_s4 + $0xf8] sm:$0xf] %vm1412_vm1, %v1410_v33 }
 0x1ae   :  { %1444 = vst.msk [vmem:[%s2612_s4 + $0x7c] sm:$0xf] %vm1412_vm1, %v1379_v34  ;;  %v1211_v35 = vld [vmem:[#allocation2 + $0x1f8] sm:$0xff] }
 0x1af   :  { %v1279_v37 = vmul.f32 %v2386_v27, %v1211_v35 }
 0x1b1   :  { %v1347_v38 = vadd.f32 %v2395_v32, %v1279_v37 }
 0x1b3   :  { %v1411_v39 = vpack.c.bf16 %v1347_v38, %v1347_v38 }
 0x1b5   :  { %1476 = vst.msk [vmem:[%s2612_s4 + $0xfc] sm:$0xf] %vm1412_vm1, %v1411_v39 }
 0x1b6   :  { %1481 = vsyncpa [#allocation4], 1 }

</bundles_post_ra>
